<compile_context>
chip_gen: v5e
topology: v5e:2x2
jax: 0.10.0
libtpu: 0.0.40
codegen_flags: <defaults>
</compile_context>

<pallas_src>
import jax
import jax.numpy as jnp
from jax.experimental import pallas as pl
from jax.experimental.pallas import tpu as pltpu


def _round_up(x, m):
    return (x + m - 1) // m * m


def _pad_axis(a, axis, target):
    pad = target - a.shape[axis]
    if pad == 0:
        return a
    widths = [(0, 0)] * a.ndim
    widths[axis] = (0, pad)
    return jnp.pad(a, widths)


_WL = 8  # left halo width of the hidden scratch -> 8-aligned interior writes


# ----------------------------------------------------------------------------
# Fused, row-tiled kernel factory
# ----------------------------------------------------------------------------
def _make_fused_kernel(*, H, W, Cin, Cpad, stride, has_expand, use_res,
                       TH_out, Tn):
    TH_in = TH_out * stride
    Wo = W // stride
    rows_scr = TH_in + 2
    WL = _WL

    def kernel(*refs):
        idx = 0
        x_ref = refs[idx]; idx += 1
        if has_expand:
            w1_ref, b1_ref = refs[idx], refs[idx + 1]; idx += 2
        wdw_ref, b2_ref, w3t_ref, b3_ref = refs[idx:idx + 4]; idx += 4
        if use_res:
            xres_ref = refs[idx]; idx += 1
        o_ref, pad_ref = refs[idx], refs[idx + 1]

        t = pl.program_id(1)
        base_in = pl.multiple_of(t * TH_in, TH_in)
        zeros_row = jnp.zeros((W, Cpad), jnp.float32)

        # (1) halo ring: only the 8-wide left/right column strips are zeroed
        #     (cheap, done every step -> no program_id gating, megacore safe).
        pad_ref[:, :WL, :] = jnp.zeros((rows_scr, WL, Cpad), jnp.float32)
        pad_ref[:, WL + W:, :] = jnp.zeros((rows_scr, WL, Cpad), jnp.float32)

        # (2) top halo row: carry previous tile's last interior row
        #     (= hidden(x[base_in-1])); zero at the image border.  The row-tile
        #     axis is "arbitrary" (sequential per image), so the carry is valid.
        if Tn > 1:
            @pl.when(t > 0)
            def _():
                pad_ref[0, WL:WL + W, :] = pad_ref[TH_in, WL:WL + W, :]

            @pl.when(t == 0)
            def _():
                pad_ref[0, WL:WL + W, :] = zeros_row
        else:
            pad_ref[0, WL:WL + W, :] = zeros_row

        def expand_rows(x_rows):
            # (R, W, Cin) f32 -> (R, W, Cpad) f32 : 1x1 expand + BN + ReLU6.
            r = x_rows.shape[0]
            xm = x_rows.reshape(r * W, Cin).astype(jnp.bfloat16)
            h = jnp.dot(xm, w1_ref[...], preferred_element_type=jnp.float32)
            h = jnp.clip(h + b1_ref[...], 0.0, 6.0)
            return h.reshape(r, W, Cpad)

        # (3) interior rows [1:TH_in+1] <- this tile's TH_in owned input rows.
        x_tile = x_ref[0, pl.ds(base_in, TH_in), :, :]            # (TH_in,W,Cin)
        if has_expand:
            pad_ref[1:TH_in + 1, WL:WL + W, :] = expand_rows(x_tile)
        else:
            # expand_ratio == 1: hidden == input; keep padded lanes zero.
            pad_ref[1:TH_in + 1, WL:WL + W, :Cin] = x_tile
            if Cpad > Cin:
                pad_ref[1:TH_in + 1, WL:WL + W, Cin:] = jnp.zeros(
                    (TH_in, W, Cpad - Cin), jnp.float32)

        # (4) bottom halo row.
        if stride == 1:
            def write_bottom(x_row):                              # (1, W, Cin)
                if has_expand:
                    pad_ref[TH_in + 1, WL:WL + W, :] = expand_rows(x_row)[0]
                else:
                    pad_ref[TH_in + 1, WL:WL + W, :Cin] = x_row[0]
                    if Cpad > Cin:
                        pad_ref[TH_in + 1, WL:WL + W, Cin:] = jnp.zeros(
                            (W, Cpad - Cin), jnp.float32)

            if Tn > 1:
                @pl.when(t < Tn - 1)
                def _():
                    write_bottom(x_ref[0, pl.ds(base_in + TH_in, 1), :, :])

                @pl.when(t == Tn - 1)
                def _():
                    pad_ref[TH_in + 1, WL:WL + W, :] = zeros_row
            else:
                pad_ref[TH_in + 1, WL:WL + W, :] = zeros_row
        else:
            # stride 2: last scratch row is never used by a tap, but the strided
            # column loads touch it -> keep it zero (no garbage VMEM is loaded).
            pad_ref[TH_in + 1, WL:WL + W, :] = zeros_row

        # (5) 3x3 depthwise + BN + ReLU6 (f32 on the VPU), stride in-kernel.
        wdw_all = wdw_ref[...]                                    # (9, Cpad)
        acc = None
        if stride == 1:
            for dy in range(3):
                for dx in range(3):
                    tap = pad_ref[dy:dy + TH_out,
                                  WL - 1 + dx:WL - 1 + dx + W, :]
                    contrib = tap * wdw_all[dy * 3 + dx]
                    acc = contrib if acc is None else acc + contrib
        else:  # stride == 2: strided column loads, rows via free pair-split.
            for dx in range(3):
                col = pad_ref[:, pl.ds(WL - 1 + dx, Wo, 2), :]    # (rows,Wo,Cpad)
                col = col.reshape(rows_scr // 2, 2, Wo, Cpad)
                for dy in range(3):
                    tap = col[dy // 2:dy // 2 + TH_out, dy % 2]
                    contrib = tap * wdw_all[dy * 3 + dx]
                    acc = contrib if acc is None else acc + contrib
        d = jnp.clip(acc + b2_ref[0], 0.0, 6.0)                   # (TH_out,Wo,Cpad)

        # (6) 1x1 project (transposed -> lane-dense output) + BN bias + residual.
        dm = d.reshape(TH_out * Wo, Cpad).astype(jnp.bfloat16)
        y_t = jnp.dot(w3t_ref[...], dm.T,
                      preferred_element_type=jnp.float32)         # (oup, M)
        y_t = y_t + b3_ref[...]                                   # (oup, 1) bcast
        if use_res:
            y_t = y_t + xres_ref[0]                               # (oup, M) f32
        o_ref[0] = y_t.astype(o_ref.dtype)

    return kernel


# ----------------------------------------------------------------------------
# Host-side param preparation: fold BN scale into weights, bf16 matmul weights
# ----------------------------------------------------------------------------
def fold_params(params, *, has_expand):
    fp = {}
    if has_expand:
        fp["w1"] = (params["w_expand"] * params["s1"][None, :]).astype(jnp.bfloat16)
        fp["b1"] = params["b1"].reshape(1, -1).astype(jnp.float32)
    fp["wdw"] = (params["w_dw"] * params["s2"][None, :]).astype(jnp.float32)
    fp["b2"] = params["b2"].reshape(1, -1).astype(jnp.float32)
    fp["w3"] = (params["w_proj"] * params["s3"][None, :]).astype(jnp.bfloat16)
    fp["b3"] = params["b3"].reshape(1, -1).astype(jnp.float32)
    return fp


# ----------------------------------------------------------------------------
# InvertedResidual forward (NCHW in / NCHW out, like the PyTorch module)
# ----------------------------------------------------------------------------
def inverted_residual(x_nchw, params, *, inp, oup, stride, expand_ratio):
    assert stride in (1, 2)
    N, Cin, H, W = x_nchw.shape
    assert Cin == inp
    if stride == 2:
        # TODO(synk): odd H/W at stride 2 needs a masked tail row/column.
        assert H % 2 == 0 and W % 2 == 0
    hidden = int(round(inp * expand_ratio))
    has_expand = expand_ratio != 1
    use_res = (stride == 1) and (inp == oup)
    Cpad = _round_up(hidden, 128)            # lane-dense hidden (inert zero pad)

    Ho = (H - 1) // stride + 1
    Wo = (W - 1) // stride + 1

    # Row tiling: TH_out output rows per grid step.  The flattened output block
    # (1, oup, TH_out*Wo) needs its lane dim to be a multiple of 128 (or the
    # full Ho*Wo); otherwise fall back to one tile per image.
    if Ho > 8 and Ho % 8 == 0 and (8 * Wo) % 128 == 0:
        TH_out = 8
    else:
        TH_out = Ho
    Tn = Ho // TH_out
    TH_in = TH_out * stride
    rows_scr = TH_in + 2
    Wp = W + 2 * _WL

    x_nhwc = jnp.transpose(x_nchw, (0, 2, 3, 1)).astype(jnp.float32)

    fp = fold_params(params, has_expand=has_expand)
    wdw = _pad_axis(fp["wdw"], 1, Cpad)
    b2 = _pad_axis(fp["b2"], 1, Cpad)
    w3t = _pad_axis(jnp.transpose(fp["w3"]), 1, Cpad)             # (oup, Cpad)
    b3 = fp["b3"].reshape(oup, 1)                                 # (oup, 1)

    kernel = _make_fused_kernel(
        H=H, W=W, Cin=inp, Cpad=Cpad, stride=stride,
        has_expand=has_expand, use_res=use_res, TH_out=TH_out, Tn=Tn)

    in_specs = [pl.BlockSpec((1, H, W, inp), lambda n, t: (n, 0, 0, 0))]
    inputs = [x_nhwc]
    if has_expand:
        w1 = _pad_axis(fp["w1"], 1, Cpad)
        b1 = _pad_axis(fp["b1"], 1, Cpad)
        in_specs += [pl.BlockSpec((inp, Cpad), lambda n, t: (0, 0)),
                     pl.BlockSpec((1, Cpad), lambda n, t: (0, 0))]
        inputs += [w1, b1]
    in_specs += [pl.BlockSpec((9, Cpad), lambda n, t: (0, 0)),
                 pl.BlockSpec((1, Cpad), lambda n, t: (0, 0)),
                 pl.BlockSpec((oup, Cpad), lambda n, t: (0, 0)),
                 pl.BlockSpec((oup, 1), lambda n, t: (0, 0))]
    inputs += [wdw, b2, w3t, b3]
    if use_res:
        # Residual tile mirrors the output tile exactly (stride==1, inp==oup).
        x_res = x_nchw.reshape(N, inp, H * W).astype(jnp.float32)
        in_specs += [pl.BlockSpec((1, inp, TH_out * Wo), lambda n, t: (n, 0, t))]
        inputs += [x_res]

    out_shape = jax.ShapeDtypeStruct((N, oup, Ho * Wo), jnp.float32)
    out_spec = pl.BlockSpec((1, oup, TH_out * Wo), lambda n, t: (n, 0, t))

    # Advisory cost + explicit scoped-VMEM sizing.
    flops = 2 * N * Ho * Wo * hidden * (9 + oup)
    if has_expand:
        flops += 2 * N * H * W * inp * hidden
    bytes_accessed = int(4 * (x_nhwc.size + N * oup * Ho * Wo)
                         + sum(int(a.size) * a.dtype.itemsize for a in inputs[1:]))
    vmem_est = 4 * rows_scr * Wp * Cpad                       # hidden scratch
    vmem_est += 2 * 4 * H * W * max(inp, 128)                 # x block (2 bufs)
    vmem_est += 2 * 4 * max(oup, 8) * max(TH_out * Wo, 128)   # out block (2 bufs)
    vmem_est += 2 * sum(int(a.size) * a.dtype.itemsize for a in inputs[1:])
    vmem_limit = int(min(128 * 1024 * 1024, max(32 * 1024 * 1024, 2 * vmem_est)))

    y = pl.pallas_call(
        kernel,
        out_shape=out_shape,
        grid=(N, Tn),
        in_specs=in_specs,
        out_specs=out_spec,
        scratch_shapes=[pltpu.VMEM((rows_scr, Wp, Cpad), jnp.float32)],
        compiler_params=pltpu.CompilerParams(
            dimension_semantics=("parallel", "arbitrary"),
            vmem_limit_bytes=vmem_limit),
        cost_estimate=pl.CostEstimate(flops=int(flops), transcendentals=0,
                                      bytes_accessed=bytes_accessed),
    )(*inputs)

    # (N, oup, Ho*Wo) -> NCHW is a free reshape (no XLA transpose round trip).
    return y.reshape(N, oup, Ho, Wo)


# ----------------------------------------------------------------------------
# Deterministic parameter init (BN already in folded eval form: scale/bias)
# ----------------------------------------------------------------------------
def make_params(key, inp, oup, expand_ratio):
    hidden = int(round(inp * expand_ratio))
    eps = 1e-5
    keys = jax.random.split(key, 15)

    def bn_fold(kg, kb, km, kv, c):
        gamma = 1.0 + 0.1 * jax.random.normal(kg, (c,), jnp.float32)
        beta = 0.1 * jax.random.normal(kb, (c,), jnp.float32)
        mean = 0.1 * jax.random.normal(km, (c,), jnp.float32)
        var = 1.0 + 0.1 * jax.random.uniform(kv, (c,), jnp.float32)
        scale = gamma / jnp.sqrt(var + eps)
        bias = beta - mean * scale
        return scale, bias

    p = {}
    if expand_ratio != 1:
        p["w_expand"] = 0.3 * jax.random.normal(keys[0], (inp, hidden), jnp.float32)
        p["s1"], p["b1"] = bn_fold(keys[1], keys[2], keys[3], keys[4], hidden)
    p["w_dw"] = 0.3 * jax.random.normal(keys[5], (9, hidden), jnp.float32)
    p["s2"], p["b2"] = bn_fold(keys[6], keys[7], keys[8], keys[9], hidden)
    p["w_proj"] = 0.3 * jax.random.normal(keys[10], (hidden, oup), jnp.float32)
    p["s3"], p["b3"] = bn_fold(keys[11], keys[12], keys[13], keys[14], oup)
    return p


# ----------------------------------------------------------------------------
# Pure-JAX reference with the same BN folding / bf16 matmul quantization as the
# kernel, so the comparison only absorbs accumulation-order noise plus a few
# bf16 rounding-boundary flips.
# ----------------------------------------------------------------------------
def ref_inverted_residual(x_nchw, params, *, inp, oup, stride, expand_ratio):
    hidden = int(round(inp * expand_ratio))
    has_expand = expand_ratio != 1
    use_res = (stride == 1) and (inp == oup)
    fp = fold_params(params, has_expand=has_expand)

    x = jnp.transpose(x_nchw, (0, 2, 3, 1)).astype(jnp.float32)
    if has_expand:
        h = jnp.einsum("nhwc,cd->nhwd", x.astype(jnp.bfloat16), fp["w1"],
                       preferred_element_type=jnp.float32)
        h = jnp.clip(h + fp["b1"][0], 0.0, 6.0)
    else:
        h = x
    wdw = fp["wdw"].reshape(3, 3, 1, hidden)
    dn = jax.lax.conv_dimension_numbers(h.shape, wdw.shape, ("NHWC", "HWIO", "NHWC"))
    d = jax.lax.conv_general_dilated(
        h, wdw, (stride, stride), ((1, 1), (1, 1)), dimension_numbers=dn,
        feature_group_count=hidden, precision=jax.lax.Precision.HIGHEST)
    d = jnp.clip(d + fp["b2"][0], 0.0, 6.0)
    y = jnp.einsum("nhwc,cd->nhwd", d.astype(jnp.bfloat16), fp["w3"],
                   preferred_element_type=jnp.float32)
    y = y + fp["b3"][0]
    if use_res:
        y = y + x
    return jnp.transpose(y, (0, 3, 1, 2))


# ----------------------------------------------------------------------------
if __name__ == "__main__":
    configs = [
        dict(inp=8, oup=8, stride=1, expand_ratio=6),    # residual + 2 row tiles
        dict(inp=8, oup=16, stride=2, expand_ratio=6),   # stride-2 path
        dict(inp=16, oup=8, stride=1, expand_ratio=1),   # no-expand path
    ]
    N, H, W = 2, 16, 16
    key = jax.random.PRNGKey(0)
    for cfg in configs:
        key, kx, kp = jax.random.split(key, 3)
        x = jax.random.normal(kx, (N, cfg["inp"], H, W), jnp.float32)
        params = make_params(kp, cfg["inp"], cfg["oup"], cfg["expand_ratio"])

        out = jax.block_until_ready(inverted_residual(x, params, **cfg))
        ref = jax.block_until_ready(ref_inverted_residual(x, params, **cfg))

        Ho = (H - 1) // cfg["stride"] + 1
        Wo = (W - 1) // cfg["stride"] + 1
        assert out.shape == (N, cfg["oup"], Ho, Wo), out.shape
        assert bool(jnp.all(jnp.isfinite(out)))
        err = jnp.abs(out - ref)
        # bf16 MXU operands (deliberate perf choice) can leave a few elements
        # one bf16 ulp apart from the reference; mean error must still be tiny.
        assert float(jnp.mean(err)) < 5e-3, float(jnp.mean(err))
        assert jnp.allclose(out, ref, rtol=5e-2, atol=5e-2), float(jnp.max(err))

    print("KERNEL_OK")
</pallas_src>

<mosaic_0001>
module attributes {stable_mosaic.version = 11 : i64} {
  func.func @kernel(%arg0: i32, %arg1: i32, %arg2: memref<1x16x16x8xf32, #tpu.memory_space<vmem>>, %arg3: memref<8x128xbf16, #tpu.memory_space<vmem>>, %arg4: memref<1x128xf32, #tpu.memory_space<vmem>>, %arg5: memref<9x128xf32, #tpu.memory_space<vmem>>, %arg6: memref<1x128xf32, #tpu.memory_space<vmem>>, %arg7: memref<8x128xbf16, #tpu.memory_space<vmem>>, %arg8: memref<8x1xf32, #tpu.memory_space<vmem>>, %arg9: memref<1x8x128xf32, #tpu.memory_space<vmem>>, %arg10: memref<1x8x128xf32, #tpu.memory_space<vmem>>, %arg11: memref<10x32x128xf32, #tpu.memory_space<vmem>>) attributes {dimension_semantics = [#tpu.dimension_semantics<parallel>, #tpu.dimension_semantics<arbitrary>], iteration_bounds = array<i64: 2, 2>, scalar_prefetch = 0 : i64, scratch_operands = 1 : i64, tpu.core_type = #tpu.core_type<tc>, window_params = [{transform_indices = @transform_0, window_bounds = array<i64: 1, 16, 16, 8>}, {pipeline_mode = #tpu.pipeline_mode<synchronous>, transform_indices = @transform_1, window_bounds = array<i64: 8, 128>}, {pipeline_mode = #tpu.pipeline_mode<synchronous>, transform_indices = @transform_2, window_bounds = array<i64: 1, 128>}, {pipeline_mode = #tpu.pipeline_mode<synchronous>, transform_indices = @transform_3, window_bounds = array<i64: 9, 128>}, {pipeline_mode = #tpu.pipeline_mode<synchronous>, transform_indices = @transform_4, window_bounds = array<i64: 1, 128>}, {pipeline_mode = #tpu.pipeline_mode<synchronous>, transform_indices = @transform_5, window_bounds = array<i64: 8, 128>}, {pipeline_mode = #tpu.pipeline_mode<synchronous>, transform_indices = @transform_6, window_bounds = array<i64: 8, 1>}, {transform_indices = @transform_7, window_bounds = array<i64: 1, 8, 128>}, {transform_indices = @transform_8, window_bounds = array<i64: 1, 8, 128>}]} {
    %c8_i32 = arith.constant 8 : i32
    %0 = arith.muli %arg1, %c8_i32 : i32
    %1 = tpu.assume_multiple %0, 8 : i32
    %cst = arith.constant 0.000000e+00 : f32
    %2 = vector.broadcast %cst : f32 to vector<16x128xf32>
    %cst_0 = arith.constant 0.000000e+00 : f32
    %3 = vector.broadcast %cst_0 : f32 to vector<10x8x128xf32>
    %c0 = arith.constant 0 : index
    %c0_1 = arith.constant 0 : index
    %c0_2 = arith.constant 0 : index
    %4 = vector.load %arg11[%c0, %c0_1, %c0_2] : memref<10x32x128xf32, #tpu.memory_space<vmem>>, vector<10x8x128xf32>
    tpu.vector_store %arg11[%c0, %c0_1, %c0_2], %3 {strides = array<i32>} : memref<10x32x128xf32, #tpu.memory_space<vmem>>, vector<10x8x128xf32>,
    %cst_3 = arith.constant 0.000000e+00 : f32
    %5 = vector.broadcast %cst_3 : f32 to vector<10x8x128xf32>
    %c0_4 = arith.constant 0 : index
    %c24 = arith.constant 24 : index
    %c0_5 = arith.constant 0 : index
    %6 = vector.load %arg11[%c0_4, %c24, %c0_5] : memref<10x32x128xf32, #tpu.memory_space<vmem>>, vector<10x8x128xf32>
    tpu.vector_store %arg11[%c0_4, %c24, %c0_5], %5 {strides = array<i32>} : memref<10x32x128xf32, #tpu.memory_space<vmem>>, vector<10x8x128xf32>,
    %c0_i32 = arith.constant 0 : i32
    %7 = arith.cmpi sgt, %arg1, %c0_i32 : i32
    %8 = arith.extui %7 : i1 to i32
    %c0_i32_6 = arith.constant 0 : i32
    %9 = arith.cmpi ne, %8, %c0_i32_6 : i32
    scf.if %9 {
      %c8_64 = arith.constant 8 : index
      %c8_65 = arith.constant 8 : index
      %c0_66 = arith.constant 0 : index
      %121 = vector.load %arg11[%c8_64, %c8_65, %c0_66] : memref<10x32x128xf32, #tpu.memory_space<vmem>>, vector<1x16x128xf32>
      %122 = vector.shape_cast %121 : vector<1x16x128xf32> to vector<16x128xf32>
      %c0_67 = arith.constant 0 : index
      %c8_68 = arith.constant 8 : index
      %c0_69 = arith.constant 0 : index
      %123 = vector.load %arg11[%c0_67, %c8_68, %c0_69] : memref<10x32x128xf32, #tpu.memory_space<vmem>>, vector<1x16x128xf32>
      %124 = vector.shape_cast %123 : vector<1x16x128xf32> to vector<16x128xf32>
      %125 = vector.shape_cast %122 : vector<16x128xf32> to vector<1x16x128xf32>
      tpu.vector_store %arg11[%c0_67, %c8_68, %c0_69], %125 {strides = array<i32>} : memref<10x32x128xf32, #tpu.memory_space<vmem>>, vector<1x16x128xf32>,
    } else {
    }
    %c0_i32_7 = arith.constant 0 : i32
    %10 = arith.cmpi eq, %arg1, %c0_i32_7 : i32
    %11 = arith.extui %10 : i1 to i32
    %c0_i32_8 = arith.constant 0 : i32
    %12 = arith.cmpi ne, %11, %c0_i32_8 : i32
    scf.if %12 {
      %c0_64 = arith.constant 0 : index
      %c8_65 = arith.constant 8 : index
      %c0_66 = arith.constant 0 : index
      %121 = vector.load %arg11[%c0_64, %c8_65, %c0_66] : memref<10x32x128xf32, #tpu.memory_space<vmem>>, vector<1x16x128xf32>
      %122 = vector.shape_cast %121 : vector<1x16x128xf32> to vector<16x128xf32>
      %123 = vector.shape_cast %2 : vector<16x128xf32> to vector<1x16x128xf32>
      tpu.vector_store %arg11[%c0_64, %c8_65, %c0_66], %123 {strides = array<i32>} : memref<10x32x128xf32, #tpu.memory_space<vmem>>, vector<1x16x128xf32>,
    } else {
    }
    %c0_9 = arith.constant 0 : index
    %13 = arith.index_cast %1 : i32 to index
    %c0_10 = arith.constant 0 : index
    %c0_11 = arith.constant 0 : index
    %14 = vector.load %arg2[%c0_9, %13, %c0_10, %c0_11] : memref<1x16x16x8xf32, #tpu.memory_space<vmem>>, vector<1x8x16x8xf32>
    %15 = vector.shape_cast %14 : vector<1x8x16x8xf32> to vector<8x16x8xf32>
    %16 = vector.shape_cast %15 : vector<8x16x8xf32> to vector<128x8xf32>
    %17 = arith.truncf %16 : vector<128x8xf32> to vector<128x8xbf16>
    %c0_12 = arith.constant 0 : index
    %c0_13 = arith.constant 0 : index
    %18 = vector.load %arg3[%c0_12, %c0_13] : memref<8x128xbf16, #tpu.memory_space<vmem>>, vector<8x128xbf16>
    %cst_14 = arith.constant dense<0.000000e+00> : vector<128x128xf32>
    %19 = tpu.matmul %17, %18, %cst_14 {dimension_numbers = #tpu.dot_dimension_numbers<[1], [0], [0], [1], [0, 0, 1, 1], [], []>} : vector<128x8xbf16>, vector<8x128xbf16>, vector<128x128xf32> -> vector<128x128xf32>
    %c0_15 = arith.constant 0 : index
    %c0_16 = arith.constant 0 : index
    %20 = vector.load %arg4[%c0_15, %c0_16] : memref<1x128xf32, #tpu.memory_space<vmem>>, vector<1x128xf32>
    %21 = vector.broadcast %20 : vector<1x128xf32> to vector<128x128xf32>
    %22 = arith.addf %19, %21 : vector<128x128xf32>
    %cst_17 = arith.constant 0.000000e+00 : f32
    %cst_18 = arith.constant 6.000000e+00 : f32
    %23 = vector.broadcast %cst_17 : f32 to vector<128x128xf32>
    %24 = arith.maximumf %23, %22 : vector<128x128xf32>
    %25 = vector.broadcast %cst_18 : f32 to vector<128x128xf32>
    %26 = arith.minimumf %25, %24 : vector<128x128xf32>
    %27 = vector.shape_cast %26 : vector<128x128xf32> to vector<8x16x128xf32>
    %c1 = arith.constant 1 : index
    %c8 = arith.constant 8 : index
    %c0_19 = arith.constant 0 : index
    %28 = vector.load %arg11[%c1, %c8, %c0_19] : memref<10x32x128xf32, #tpu.memory_space<vmem>>, vector<8x16x128xf32>
    tpu.vector_store %arg11[%c1, %c8, %c0_19], %27 {strides = array<i32>} : memref<10x32x128xf32, #tpu.memory_space<vmem>>, vector<8x16x128xf32>,
    %c1_i32 = arith.constant 1 : i32
    %29 = arith.cmpi slt, %arg1, %c1_i32 : i32
    %30 = arith.extui %29 : i1 to i32
    %c0_i32_20 = arith.constant 0 : i32
    %31 = arith.cmpi ne, %30, %c0_i32_20 : i32
    scf.if %31 {
      %c8_i32_64 = arith.constant 8 : i32
      %121 = arith.addi %1, %c8_i32_64 : i32
      %c0_65 = arith.constant 0 : index
      %122 = arith.index_cast %121 : i32 to index
      %c0_66 = arith.constant 0 : index
      %c0_67 = arith.constant 0 : index
      %123 = vector.load %arg2[%c0_65, %122, %c0_66, %c0_67] : memref<1x16x16x8xf32, #tpu.memory_space<vmem>>, vector<1x1x16x8xf32>
      %124 = vector.shape_cast %123 : vector<1x1x16x8xf32> to vector<1x16x8xf32>
      %125 = vector.shape_cast %124 : vector<1x16x8xf32> to vector<16x8xf32>
      %126 = arith.truncf %125 : vector<16x8xf32> to vector<16x8xbf16>
      %c0_68 = arith.constant 0 : index
      %c0_69 = arith.constant 0 : index
      %127 = vector.load %arg3[%c0_68, %c0_69] : memref<8x128xbf16, #tpu.memory_space<vmem>>, vector<8x128xbf16>
      %cst_70 = arith.constant dense<0.000000e+00> : vector<16x128xf32>
      %128 = tpu.matmul %126, %127, %cst_70 {dimension_numbers = #tpu.dot_dimension_numbers<[1], [0], [0], [1], [0, 0, 1, 1], [], []>} : vector<16x8xbf16>, vector<8x128xbf16>, vector<16x128xf32> -> vector<16x128xf32>
      %c0_71 = arith.constant 0 : index
      %c0_72 = arith.constant 0 : index
      %129 = vector.load %arg4[%c0_71, %c0_72] : memref<1x128xf32, #tpu.memory_space<vmem>>, vector<1x128xf32>
      %130 = vector.broadcast %129 : vector<1x128xf32> to vector<16x128xf32>
      %131 = arith.addf %128, %130 : vector<16x128xf32>
      %cst_73 = arith.constant 0.000000e+00 : f32
      %cst_74 = arith.constant 6.000000e+00 : f32
      %132 = vector.broadcast %cst_73 : f32 to vector<16x128xf32>
      %133 = arith.maximumf %132, %131 : vector<16x128xf32>
      %134 = vector.broadcast %cst_74 : f32 to vector<16x128xf32>
      %135 = arith.minimumf %134, %133 : vector<16x128xf32>
      %136 = vector.shape_cast %135 : vector<16x128xf32> to vector<1x16x128xf32>
      %137 = vector.shape_cast %136 : vector<1x16x128xf32> to vector<16x128xf32>
      %c9_75 = arith.constant 9 : index
      %c8_76 = arith.constant 8 : index
      %c0_77 = arith.constant 0 : index
      %138 = vector.load %arg11[%c9_75, %c8_76, %c0_77] : memref<10x32x128xf32, #tpu.memory_space<vmem>>, vector<1x16x128xf32>
      %139 = vector.shape_cast %138 : vector<1x16x128xf32> to vector<16x128xf32>
      %140 = vector.shape_cast %137 : vector<16x128xf32> to vector<1x16x128xf32>
      tpu.vector_store %arg11[%c9_75, %c8_76, %c0_77], %140 {strides = array<i32>} : memref<10x32x128xf32, #tpu.memory_space<vmem>>, vector<1x16x128xf32>,
    } else {
    }
    %c1_i32_21 = arith.constant 1 : i32
    %32 = arith.cmpi eq, %arg1, %c1_i32_21 : i32
    %33 = arith.extui %32 : i1 to i32
    %c0_i32_22 = arith.constant 0 : i32
    %34 = arith.cmpi ne, %33, %c0_i32_22 : i32
    scf.if %34 {
      %c9_64 = arith.constant 9 : index
      %c8_65 = arith.constant 8 : index
      %c0_66 = arith.constant 0 : index
      %121 = vector.load %arg11[%c9_64, %c8_65, %c0_66] : memref<10x32x128xf32, #tpu.memory_space<vmem>>, vector<1x16x128xf32>
      %122 = vector.shape_cast %121 : vector<1x16x128xf32> to vector<16x128xf32>
      %123 = vector.shape_cast %2 : vector<16x128xf32> to vector<1x16x128xf32>
      tpu.vector_store %arg11[%c9_64, %c8_65, %c0_66], %123 {strides = array<i32>} : memref<10x32x128xf32, #tpu.memory_space<vmem>>, vector<1x16x128xf32>,
    } else {
    }
    %c0_23 = arith.constant 0 : index
    %c0_24 = arith.constant 0 : index
    %35 = vector.load %arg5[%c0_23, %c0_24] : memref<9x128xf32, #tpu.memory_space<vmem>>, vector<9x128xf32>
    %c0_25 = arith.constant 0 : index
    %c7 = arith.constant 7 : index
    %c0_26 = arith.constant 0 : index
    %36 = vector.load %arg11[%c0_25, %c7, %c0_26] : memref<10x32x128xf32, #tpu.memory_space<vmem>>, vector<8x16x128xf32>
    %37 = vector.extract_strided_slice %35 {offsets = [0, 0], sizes = [1, 128], strides = [1, 1]} : vector<9x128xf32> to vector<1x128xf32>
    %38 = vector.shape_cast %37 : vector<1x128xf32> to vector<128xf32>
    %39 = vector.shape_cast %38 : vector<128xf32> to vector<1x1x128xf32>
    %40 = vector.broadcast %39 : vector<1x1x128xf32> to vector<8x16x128xf32>
    %41 = arith.mulf %36, %40 : vector<8x16x128xf32>
    %c0_27 = arith.constant 0 : index
    %c8_28 = arith.constant 8 : index
    %c0_29 = arith.constant 0 : index
    %42 = vector.load %arg11[%c0_27, %c8_28, %c0_29] : memref<10x32x128xf32, #tpu.memory_space<vmem>>, vector<8x16x128xf32>
    %43 = vector.extract_strided_slice %35 {offsets = [1, 0], sizes = [1, 128], strides = [1, 1]} : vector<9x128xf32> to vector<1x128xf32>
    %44 = vector.shape_cast %43 : vector<1x128xf32> to vector<128xf32>
    %45 = vector.shape_cast %44 : vector<128xf32> to vector<1x1x128xf32>
    %46 = vector.broadcast %45 : vector<1x1x128xf32> to vector<8x16x128xf32>
    %47 = arith.mulf %42, %46 : vector<8x16x128xf32>
    %48 = arith.addf %41, %47 : vector<8x16x128xf32>
    %c0_30 = arith.constant 0 : index
    %c9 = arith.constant 9 : index
    %c0_31 = arith.constant 0 : index
    %49 = vector.load %arg11[%c0_30, %c9, %c0_31] : memref<10x32x128xf32, #tpu.memory_space<vmem>>, vector<8x16x128xf32>
    %50 = vector.extract_strided_slice %35 {offsets = [2, 0], sizes = [1, 128], strides = [1, 1]} : vector<9x128xf32> to vector<1x128xf32>
    %51 = vector.shape_cast %50 : vector<1x128xf32> to vector<128xf32>
    %52 = vector.shape_cast %51 : vector<128xf32> to vector<1x1x128xf32>
    %53 = vector.broadcast %52 : vector<1x1x128xf32> to vector<8x16x128xf32>
    %54 = arith.mulf %49, %53 : vector<8x16x128xf32>
    %55 = arith.addf %48, %54 : vector<8x16x128xf32>
    %c1_32 = arith.constant 1 : index
    %c7_33 = arith.constant 7 : index
    %c0_34 = arith.constant 0 : index
    %56 = vector.load %arg11[%c1_32, %c7_33, %c0_34] : memref<10x32x128xf32, #tpu.memory_space<vmem>>, vector<8x16x128xf32>
    %57 = vector.extract_strided_slice %35 {offsets = [3, 0], sizes = [1, 128], strides = [1, 1]} : vector<9x128xf32> to vector<1x128xf32>
    %58 = vector.shape_cast %57 : vector<1x128xf32> to vector<128xf32>
    %59 = vector.shape_cast %58 : vector<128xf32> to vector<1x1x128xf32>
    %60 = vector.broadcast %59 : vector<1x1x128xf32> to vector<8x16x128xf32>
    %61 = arith.mulf %56, %60 : vector<8x16x128xf32>
    %62 = arith.addf %55, %61 : vector<8x16x128xf32>
    %c1_35 = arith.constant 1 : index
    %c8_36 = arith.constant 8 : index
    %c0_37 = arith.constant 0 : index
    %63 = vector.load %arg11[%c1_35, %c8_36, %c0_37] : memref<10x32x128xf32, #tpu.memory_space<vmem>>, vector<8x16x128xf32>
    %64 = vector.extract_strided_slice %35 {offsets = [4, 0], sizes = [1, 128], strides = [1, 1]} : vector<9x128xf32> to vector<1x128xf32>
    %65 = vector.shape_cast %64 : vector<1x128xf32> to vector<128xf32>
    %66 = vector.shape_cast %65 : vector<128xf32> to vector<1x1x128xf32>
    %67 = vector.broadcast %66 : vector<1x1x128xf32> to vector<8x16x128xf32>
    %68 = arith.mulf %63, %67 : vector<8x16x128xf32>
    %69 = arith.addf %62, %68 : vector<8x16x128xf32>
    %c1_38 = arith.constant 1 : index
    %c9_39 = arith.constant 9 : index
    %c0_40 = arith.constant 0 : index
    %70 = vector.load %arg11[%c1_38, %c9_39, %c0_40] : memref<10x32x128xf32, #tpu.memory_space<vmem>>, vector<8x16x128xf32>
    %71 = vector.extract_strided_slice %35 {offsets = [5, 0], sizes = [1, 128], strides = [1, 1]} : vector<9x128xf32> to vector<1x128xf32>
    %72 = vector.shape_cast %71 : vector<1x128xf32> to vector<128xf32>
    %73 = vector.shape_cast %72 : vector<128xf32> to vector<1x1x128xf32>
    %74 = vector.broadcast %73 : vector<1x1x128xf32> to vector<8x16x128xf32>
    %75 = arith.mulf %70, %74 : vector<8x16x128xf32>
    %76 = arith.addf %69, %75 : vector<8x16x128xf32>
    %c2 = arith.constant 2 : index
    %c7_41 = arith.constant 7 : index
    %c0_42 = arith.constant 0 : index
    %77 = vector.load %arg11[%c2, %c7_41, %c0_42] : memref<10x32x128xf32, #tpu.memory_space<vmem>>, vector<8x16x128xf32>
    %78 = vector.extract_strided_slice %35 {offsets = [6, 0], sizes = [1, 128], strides = [1, 1]} : vector<9x128xf32> to vector<1x128xf32>
    %79 = vector.shape_cast %78 : vector<1x128xf32> to vector<128xf32>
    %80 = vector.shape_cast %79 : vector<128xf32> to vector<1x1x128xf32>
    %81 = vector.broadcast %80 : vector<1x1x128xf32> to vector<8x16x128xf32>
    %82 = arith.mulf %77, %81 : vector<8x16x128xf32>
    %83 = arith.addf %76, %82 : vector<8x16x128xf32>
    %c2_43 = arith.constant 2 : index
    %c8_44 = arith.constant 8 : index
    %c0_45 = arith.constant 0 : index
    %84 = vector.load %arg11[%c2_43, %c8_44, %c0_45] : memref<10x32x128xf32, #tpu.memory_space<vmem>>, vector<8x16x128xf32>
    %85 = vector.extract_strided_slice %35 {offsets = [7, 0], sizes = [1, 128], strides = [1, 1]} : vector<9x128xf32> to vector<1x128xf32>
    %86 = vector.shape_cast %85 : vector<1x128xf32> to vector<128xf32>
    %87 = vector.shape_cast %86 : vector<128xf32> to vector<1x1x128xf32>
    %88 = vector.broadcast %87 : vector<1x1x128xf32> to vector<8x16x128xf32>
    %89 = arith.mulf %84, %88 : vector<8x16x128xf32>
    %90 = arith.addf %83, %89 : vector<8x16x128xf32>
    %c2_46 = arith.constant 2 : index
    %c9_47 = arith.constant 9 : index
    %c0_48 = arith.constant 0 : index
    %91 = vector.load %arg11[%c2_46, %c9_47, %c0_48] : memref<10x32x128xf32, #tpu.memory_space<vmem>>, vector<8x16x128xf32>
    %92 = vector.extract_strided_slice %35 {offsets = [8, 0], sizes = [1, 128], strides = [1, 1]} : vector<9x128xf32> to vector<1x128xf32>
    %93 = vector.shape_cast %92 : vector<1x128xf32> to vector<128xf32>
    %94 = vector.shape_cast %93 : vector<128xf32> to vector<1x1x128xf32>
    %95 = vector.broadcast %94 : vector<1x1x128xf32> to vector<8x16x128xf32>
    %96 = arith.mulf %91, %95 : vector<8x16x128xf32>
    %97 = arith.addf %90, %96 : vector<8x16x128xf32>
    %c0_49 = arith.constant 0 : index
    %c0_50 = arith.constant 0 : index
    %98 = vector.load %arg6[%c0_49, %c0_50] : memref<1x128xf32, #tpu.memory_space<vmem>>, vector<1x128xf32>
    %99 = vector.shape_cast %98 : vector<1x128xf32> to vector<128xf32>
    %100 = vector.shape_cast %99 : vector<128xf32> to vector<1x1x128xf32>
    %101 = vector.broadcast %100 : vector<1x1x128xf32> to vector<8x16x128xf32>
    %102 = arith.addf %97, %101 : vector<8x16x128xf32>
    %cst_51 = arith.constant 0.000000e+00 : f32
    %cst_52 = arith.constant 6.000000e+00 : f32
    %103 = vector.broadcast %cst_51 : f32 to vector<8x16x128xf32>
    %104 = arith.maximumf %103, %102 : vector<8x16x128xf32>
    %105 = vector.broadcast %cst_52 : f32 to vector<8x16x128xf32>
    %106 = arith.minimumf %105, %104 : vector<8x16x128xf32>
    %107 = vector.shape_cast %106 : vector<8x16x128xf32> to vector<128x128xf32>
    %108 = arith.truncf %107 : vector<128x128xf32> to vector<128x128xbf16>
    %c0_53 = arith.constant 0 : index
    %c0_54 = arith.constant 0 : index
    %109 = vector.load %arg7[%c0_53, %c0_54] : memref<8x128xbf16, #tpu.memory_space<vmem>>, vector<8x128xbf16>
    %110 = tpu.transpose %108, [1, 0] : vector<128x128xbf16> -> vector<128x128xbf16>
    %cst_55 = arith.constant dense<0.000000e+00> : vector<8x128xf32>
    %111 = tpu.matmul %109, %110, %cst_55 {dimension_numbers = #tpu.dot_dimension_numbers<[1], [0], [0], [1], [0, 0, 1, 1], [], []>} : vector<8x128xbf16>, vector<128x128xbf16>, vector<8x128xf32> -> vector<8x128xf32>
    %c0_56 = arith.constant 0 : index
    %c0_57 = arith.constant 0 : index
    %112 = vector.load %arg8[%c0_56, %c0_57] : memref<8x1xf32, #tpu.memory_space<vmem>>, vector<8x1xf32>
    %113 = vector.broadcast %112 : vector<8x1xf32> to vector<8x128xf32>
    %114 = arith.addf %111, %113 : vector<8x128xf32>
    %c0_58 = arith.constant 0 : index
    %c0_59 = arith.constant 0 : index
    %c0_60 = arith.constant 0 : index
    %115 = vector.load %arg9[%c0_58, %c0_59, %c0_60] : memref<1x8x128xf32, #tpu.memory_space<vmem>>, vector<1x8x128xf32>
    %116 = vector.shape_cast %115 : vector<1x8x128xf32> to vector<8x128xf32>
    %117 = arith.addf %114, %116 : vector<8x128xf32>
    %c0_61 = arith.constant 0 : index
    %c0_62 = arith.constant 0 : index
    %c0_63 = arith.constant 0 : index
    %118 = vector.load %arg10[%c0_61, %c0_62, %c0_63] : memref<1x8x128xf32, #tpu.memory_space<vmem>>, vector<1x8x128xf32>
    %119 = vector.shape_cast %118 : vector<1x8x128xf32> to vector<8x128xf32>
    %120 = vector.shape_cast %117 : vector<8x128xf32> to vector<1x8x128xf32>
    tpu.vector_store %arg10[%c0_61, %c0_62, %c0_63], %120 {strides = array<i32>} : memref<1x8x128xf32, #tpu.memory_space<vmem>>, vector<1x8x128xf32>,
    return
  }
  func.func @transform_0(%arg0: i32, %arg1: i32) -> (i32, i32, i32, i32) {
    %c0_i32 = arith.constant 0 : i32
    %c0_i32_0 = arith.constant 0 : i32
    %c0_i32_1 = arith.constant 0 : i32
    %c0_i32_2 = arith.constant 0 : i32
    return %arg0, %c0_i32, %c0_i32_0, %c0_i32_1 : i32, i32, i32, i32
  }
  func.func @transform_1(%arg0: i32, %arg1: i32) -> (i32, i32) {
    %c0_i32 = arith.constant 0 : i32
    %c0_i32_0 = arith.constant 0 : i32
    %c0_i32_1 = arith.constant 0 : i32
    return %c0_i32, %c0_i32_0 : i32, i32
  }
  func.func @transform_2(%arg0: i32, %arg1: i32) -> (i32, i32) {
    %c0_i32 = arith.constant 0 : i32
    %c0_i32_0 = arith.constant 0 : i32
    %c0_i32_1 = arith.constant 0 : i32
    return %c0_i32, %c0_i32_0 : i32, i32
  }
  func.func @transform_3(%arg0: i32, %arg1: i32) -> (i32, i32) {
    %c0_i32 = arith.constant 0 : i32
    %c0_i32_0 = arith.constant 0 : i32
    %c0_i32_1 = arith.constant 0 : i32
    return %c0_i32, %c0_i32_0 : i32, i32
  }
  func.func @transform_4(%arg0: i32, %arg1: i32) -> (i32, i32) {
    %c0_i32 = arith.constant 0 : i32
    %c0_i32_0 = arith.constant 0 : i32
    %c0_i32_1 = arith.constant 0 : i32
    return %c0_i32, %c0_i32_0 : i32, i32
  }
  func.func @transform_5(%arg0: i32, %arg1: i32) -> (i32, i32) {
    %c0_i32 = arith.constant 0 : i32
    %c0_i32_0 = arith.constant 0 : i32
    %c0_i32_1 = arith.constant 0 : i32
    return %c0_i32, %c0_i32_0 : i32, i32
  }
  func.func @transform_6(%arg0: i32, %arg1: i32) -> (i32, i32) {
    %c0_i32 = arith.constant 0 : i32
    %c0_i32_0 = arith.constant 0 : i32
    %c0_i32_1 = arith.constant 0 : i32
    return %c0_i32, %c0_i32_0 : i32, i32
  }
  func.func @transform_7(%arg0: i32, %arg1: i32) -> (i32, i32, i32) {
    %c0_i32 = arith.constant 0 : i32
    %c0_i32_0 = arith.constant 0 : i32
    return %arg0, %c0_i32, %arg1 : i32, i32, i32
  }
  func.func @transform_8(%arg0: i32, %arg1: i32) -> (i32, i32, i32) {
    %c0_i32 = arith.constant 0 : i32
    %c0_i32_0 = arith.constant 0 : i32
    return %arg0, %c0_i32, %arg1 : i32, i32, i32
  }
}

</mosaic_0001>

<bundles_post_ra>
// kernel: tpu_custom_call.1
= control target key start
LH: loop header
LB: loop body
LE: loop exit
PB: predicated region body
PF: predicated region fallthrough
CT: control target
= control target key end

     0   :  { %13 = vsyncpa [#allocation4], 0  ;;  %s2110_s0 = inlined_call_operand.vmem [shape: f32[2,16,16,8], index: 0, kind: input, shape index: {}]   ;;  %s2111_s1 = inlined_call_operand.vmem [shape: bf16[8,128], index: 1, kind: input, shape index: {}]   ;;  %s2112_s2 = inlined_call_operand.vmem [shape: f32[1,128], index: 2, kind: input, shape index: {}]   ;;  %s2113_s3 = inlined_call_operand.vmem [shape: f32[9,128], index: 3, kind: input, shape index: {}]   ;;  %s2114_s4 = inlined_call_operand.vmem [shape: f32[1,128], index: 4, kind: input, shape index: {}]   ;;  %s2115_s5 = inlined_call_operand.vmem [shape: bf16[8,128], index: 5, kind: input, shape index: {}]   ;;  %s2116_s6 = inlined_call_operand.vmem [shape: f32[8,1], index: 6, kind: input, shape index: {}]   ;;  %s2117_s7 = inlined_call_operand.vmem [shape: f32[2,8,256], index: 7, kind: input, shape index: {}]   ;;  %s2118_s8 = inlined_call_operand.hbm [shape: f32[2,8,256], index: 8, kind: output, shape index: {}]  }
   0x1   :  { %15 = vsyncpa [#allocation4 + $0x1], 0  ;;  %s1483_s27 = smov 0   ;;  %s1485_s28 = smov 0  }
   0x2   :  { %s1487_s29 = smov 0   ;;  %s1489_s30 = smov 0  }
   0x3   :  { %s1491_s9 = smov 0   ;;  %s1493_s10 = smov 0  }
   0x4   :  { %s1495_s11 = smov 0   ;;  %s1497_s12 = smov 0  }
   0x5 LB: > { %2124 = sst [smem:[#allocation6_spill]] %s1424_s10  ;;  %s1218_s13 = sadd.s32 4294967295, %s1432_s12   ;;  %s1432_s12 = sphi %s1497_s12, %s21_s12   ;;  %s1428_s11 = sphi %s1495_s11, %s2134_s11   ;;  %s1424_s10 = sphi %s1493_s10, %s2133_s10   ;;  %s1420_s9 = sphi %s1491_s9, %s2132_s9   ;;  %s1416_s30 = sphi %s1489_s30, %s2131_s30   ;;  %s1412_s29 = sphi %s1487_s29, %s2137_s29   ;;  %s1408_s28 = sphi %s1485_s28, %s2136_s28   ;;  %s1404_s27 = sphi %s1483_s27, %s2135_s27  }
   0x6   : > { %2125 = sst [smem:[#allocation7_spill]] %s1428_s11  ;;  %s1219_s14 = sadd.s32 4294967294, %s1432_s12  }
   0x7   : > { %s30_s15 = sadd.s32 1, %s1424_s10  ;;  %s33_s16 = sadd.s32 1, %s1428_s11 }
   0x8   : > { %p31_p0 = scmp.ge.s32.totalorder %s30_s15, 2  ;;  %p232_p1 = scmp.ne.s32.totalorder %s1412_s29, %s1408_s28 }
   0x9   : > { %p233_p2 = scmp.eq.s32.totalorder %s1218_s13, 3  ;;  %p238_p5 = scmp.ne.s32.totalorder %s1408_s28, %s1404_s27 }
   0xa   : > { %s2139_s15 = smov (%p31_p0, %s30_s15), 0  ;;  %s2141_s16 = smov (!%p31_p0, %s33_s16), %s1428_s11 }
   0xb   : > { %2126 = sst [smem:[#allocation8_spill]] %s2139_s15  ;;  %s218_s17 = ssub.s32 %s1424_s10, %s2139_s15 }
   0xc   : > { %p1534_p3 = por %p233_p2, %p232_p1  ;;  %p35_p4 = scmp.ge.s32.totalorder %s2141_s16, 2 }
   0xd   : > { %p239_p6 = scmp.eq.s32.totalorder %s1219_s14, 3  ;;  %p1222_p7 = scmp.ge.s32.totalorder %s1432_s12, 1 }
   0xe   : > { %s2143_s16 = smov (%p35_p4, %s2141_s16), 0  ;;  %p294_p9 = scmp.lt.s32.totalorder %s1432_s12, 5 }
   0xf   : > { %2128 = sst [smem:[#allocation9_spill]] %s2143_s16  ;;  %p1543_p8 = por %p239_p6, %p238_p5 }
  0x10   : > { %s217_s20 = ssub.s32 %s1428_s11, %s2143_s16  ;;  %s222_s21 = sadd.s32 1, %s1412_s29 }
  0x11   : > { %s219_s22 = sor.u32 %s218_s17, %s217_s20  ;;  %p295_p10 = pnand %p1222_p7, %p294_p9 }
  0x12   : > { %p220_p11 = scmp.eq.s32.totalorder %s219_s22, 0  ;;  %s2120_s24 = sand.u32 (!%p295_p10), 1, %s1408_s28  }
  0x13   : > { %298 = sbr.rel (%p295_p10) target bundleno = 624 (0x270), region = 52  ;;  %p336_p12 = scmp.lt.s32.totalorder (!%p295_p10), %s1420_s9, 1 }
  0x14   : > { %s1552_s23 = scalar_select %p220_p11, %s1412_s29, %s222_s21  }
  0x15   : > { %s1558_s25 = sshll.u32 (!%p295_p10), %s2120_s24, 3  ;;  %p343_p13 = scmp.lt.s32.totalorder (!%p295_p10), %s1416_s30, 1 }
  0x16   : > { %p1229_p0 = scmp.le.s32.totalorder (!%p295_p10), %s1416_s30, 0 }
  0x18   : > { %v1434_v0 = vmov 0.0   ;;  %s337_s26 = scalar_select %p336_p12, %s1420_s9, 1 }
  0x19   : > { %351 = vst [vmem:[#allocation2] sm:$0xff] %v1434_v0  ;;  %s344_s13 = scalar_select %p343_p13, %s1416_s30, 1 }
  0x1a   : > { %352 = vst [vmem:[#allocation2 + $0x20] sm:$0xff] %v1434_v0  ;;  %s1252_s14 = sshll.u32 %s337_s26, 8  ;;  %s1226_s17 = sshll.u32 %s337_s26, 1 }
  0x1b   : > { %353 = vst [vmem:[#allocation2 + $0x40] sm:$0xff] %v1434_v0  ;;  %s1566_s22 = scalar_lea.vmem %s2110_s0, %s1252_s14  ;;  %s346_s16 = sadd.s32 %s1226_s17, %s344_s13 }
  0x1c   : > { %354 = vst [vmem:[#allocation2 + $0x60] sm:$0xff] %v1434_v0  ;;  %s1227_s24 = sshll.u32 %s346_s16, 3  ;;  %s335_s16 = scalar_lea.vmem [#allocation3], %s1558_s25 }
  0x1d   : > { %355 = vst [vmem:[#allocation2 + $0x80] sm:$0xff] %v1434_v0  ;;  %s1571_s10 = scalar_lea.vmem %s2117_s7, %s1227_s24 }
  0x1e   : > { %356 = vst [vmem:[#allocation2 + $0xa0] sm:$0xff] %v1434_v0 }
  0x1f   : > { %357 = vst [vmem:[#allocation2 + $0xc0] sm:$0xff] %v1434_v0 }
  0x20   : > { %358 = vst [vmem:[#allocation2 + $0xe0] sm:$0xff] %v1434_v0 }
  0x21   : > { %359 = vst [vmem:[#allocation2 + $0x100] sm:$0xff] %v1434_v0 }
  0x22   : > { %360 = vst [vmem:[#allocation2 + $0x120] sm:$0xff] %v1434_v0 }
  0x23   : > { %361 = vst [vmem:[#allocation2 + $0x18] sm:$0xff] %v1434_v0 }
  0x24   : > { %362 = vst [vmem:[#allocation2 + $0x38] sm:$0xff] %v1434_v0 }
  0x25   : > { %363 = vst [vmem:[#allocation2 + $0x58] sm:$0xff] %v1434_v0 }
  0x26   : > { %364 = vst [vmem:[#allocation2 + $0x78] sm:$0xff] %v1434_v0 }
  0x27   : > { %365 = vst [vmem:[#allocation2 + $0x98] sm:$0xff] %v1434_v0 }
  0x28   : > { %366 = vst [vmem:[#allocation2 + $0xb8] sm:$0xff] %v1434_v0  ;;  %374 = sbr.rel (%p1229_p0) target bundleno = 48 (0x30), region = 56 }
  0x29   : > { %367 = vst [vmem:[#allocation2 + $0xd8] sm:$0xff] %v1434_v0 }
  0x2a   : > { %368 = vst [vmem:[#allocation2 + $0xf8] sm:$0xff] %v1434_v0 }
  0x2b   : > { %369 = vst [vmem:[#allocation2 + $0x118] sm:$0xff] %v1434_v0 }
  0x2c   : > { %370 = vst [vmem:[#allocation2 + $0x138] sm:$0xff] %v1434_v0 }
  0x2d   : > { %v376_v1 = vld [vmem:[#allocation2 + $0x108] sm:$0xff]  ;;  %v377_v2 = vld [vmem:[#allocation2 + $0x110] sm:$0xff] }
  0x2e   : > { %378 = vst [vmem:[#allocation2 + $0x8] sm:$0xff] %v376_v1 }
  0x2f   : > { %379 = vst [vmem:[#allocation2 + $0x10] sm:$0xff] %v377_v2 }
  0x30 PF: > { %p1230_p1 = scmp.ne.s32.totalorder %s1416_s30, 0 }
  0x32   : > { %383 = sbr.rel (%p1230_p1) target bundleno = 58 (0x3a), region = 60 }
  0x37   : > { %v1435_v3 = vmov 0.0  }
  0x38   : > { %384 = vst [vmem:[#allocation2 + $0x8] sm:$0xff] %v1435_v3 }
  0x39   : > { %385 = vst [vmem:[#allocation2 + $0x10] sm:$0xff] %v1435_v3 }
  0x3a PF: > { %v412_v4 = vld [vmem:[%s2111_s1] sm:$0xf]  ;;  %vm442_vm0 = vcmask 1043456   ;;  %s1253_s24 = sshll.u32 %s1416_s30, 7  ;;  %vm417_vm1 = vcmask 64512   ;;  %p1240_p2 = scmp.ge.s32.totalorder %s1416_s30, 1 }
  0x3b   : > { %v444_v5 = vsel %vm442_vm0, %v412_v4, 0  ;;  %s1582_s26 = scalar_lea.vmem %s1566_s22, %s1253_s24  ;;  %v1611_v30 = vld [vmem:[%s2112_s2] ss:$0 sm:$0xff] }
  0x3c   : > { %453 = vmatpush.bf16.msra.mxu0 %v444_v5  ;;  %1255 = vmatpush.bf16.msra.mxu1 %v444_v5  ;;  %v388_v6 = vld [vmem:[%s1582_s26] sm:$0xff]  ;;  %v389_v7 = vld [vmem:[%s1582_s26 + $0x8] sm:$0xff]  ;;  %v390_v18 = vld [vmem:[%s1582_s26 + $0x10] sm:$0xff] }
  0x3d   : > { %v392_v8 = vld [vmem:[%s1582_s26 + $0x20] sm:$0xff]  ;;  %1256 = vmatpush.bf16.msra.mxu2 %v444_v5  ;;  %1257 = vmatpush.bf16.msra.mxu3 %v444_v5  ;;  %v404_v9 = vpack.c.bf16 %v389_v7, %v388_v6  ;;  %v393_v10 = vld [vmem:[%s1582_s26 + $0x28] sm:$0xff]  ;;  %v391_v19 = vld [vmem:[%s1582_s26 + $0x18] sm:$0xff] }
  0x3e   : > { %v396_v11 = vld [vmem:[%s1582_s26 + $0x40] sm:$0xff]  ;;  %v397_v12 = vld [vmem:[%s1582_s26 + $0x48] sm:$0xff]  ;;  %v406_v13 = vpack.c.bf16 %v393_v10, %v392_v8  ;;  %v394_v20 = vld [vmem:[%s1582_s26 + $0x30] sm:$0xff]  ;;  %v405_v26 = vpack.c.bf16 %v391_v19, %v390_v18 }
  0x3f   : > { %v408_v14 = vpack.c.bf16 %v397_v12, %v396_v11  ;;  %v400_v15 = vld [vmem:[%s1582_s26 + $0x60] sm:$0xff]  ;;  %v401_v16 = vld [vmem:[%s1582_s26 + $0x68] sm:$0xff]  ;;  %1232 = vmatmul.msk.bf16.vlgmr.msra.gmra.mxu0 %vm417_vm1, %v404_v9  ;;  %v395_v21 = vld [vmem:[%s1582_s26 + $0x38] sm:$0xff] }
  0x40   : > { %v410_v17 = vpack.c.bf16 %v401_v16, %v400_v15  ;;  %1234 = vmatmul.msk.bf16.vlgmr.msra.gmra.mxu1 %vm417_vm1, %v406_v13  ;;  %v398_v22 = vld [vmem:[%s1582_s26 + $0x50] sm:$0xff]  ;;  %v399_v23 = vld [vmem:[%s1582_s26 + $0x58] sm:$0xff]  ;;  %v407_v27 = vpack.c.bf16 %v395_v21, %v394_v20 }
  0x41   : > { %1236 = vmatmul.msk.bf16.vlgmr.msra.gmra.mxu2 %vm417_vm1, %v408_v14  ;;  %v402_v24 = vld [vmem:[%s1582_s26 + $0x70] sm:$0xff]  ;;  %v403_v25 = vld [vmem:[%s1582_s26 + $0x78] sm:$0xff]  ;;  %v409_v28 = vpack.c.bf16 %v399_v23, %v398_v22 }
  0x42   : > { %1238 = vmatmul.msk.bf16.vlgmr.msra.gmra.mxu3 %vm417_vm1, %v410_v17  ;;  %v411_v29 = vpack.c.bf16 %v403_v25, %v402_v24 }
  0x4f   : > { %1233 = vmatmul.msk.bf16.gmra.mxu0 %vm417_vm1, %v405_v26 }
  0x50   : > { %1235 = vmatmul.msk.bf16.gmra.mxu1 %vm417_vm1, %v407_v27 }
  0x51   : > { %1237 = vmatmul.msk.bf16.gmra.mxu2 %vm417_vm1, %v409_v28 }
  0x52   : > { %1239 = vmatmul.msk.bf16.gmra.mxu3 %vm417_vm1, %v411_v29 }
  0xbc   : > { %v455_v31 = vpop.f32.mrf.mxu0 }
  0xbd   : > { %v456_v32 = vadd.f32 %v1611_v30, %v455_v31  ;;  %v465_v33 = vpop.f32.mrf.mxu1 }
  0xbe   : > { %v466_v34 = vadd.f32 %v1611_v30, %v465_v33 }
  0xbf   : > { %v495_v35 = vmax.f32 %v456_v32, 0.0 }
  0xc0   : > { %v499_v36 = vmax.f32 %v466_v34, 0.0 }
  0xc1   : > { %v511_v37 = vmin.f32 %v495_v35, 6.0 }
  0xc2   : > { %v515_v38 = vmin.f32 %v499_v36, 6.0 }
  0xc3   : > { %528 = vst [vmem:[#allocation2 + $0x28] sm:$0xff] %v511_v37 }
  0xc4   : > { %v475_v39 = vpop.f32.mrf.mxu2  ;;  %532 = vst [vmem:[#allocation2 + $0x68] sm:$0xff] %v515_v38  ;;  %v457_v42 = vpop.f32.mrf.mxu0 }
  0xc5   : > { %v476_v40 = vadd.f32 %v1611_v30, %v475_v39  ;;  %v485_v41 = vpop.f32.mrf.mxu3  ;;  %v458_v44 = vadd.f32 %v1611_v30, %v457_v42  ;;  %v467_v45 = vpop.f32.mrf.mxu1 }
  0xc6   : > { %v486_v43 = vadd.f32 %v1611_v30, %v485_v41  ;;  %v468_v47 = vadd.f32 %v1611_v30, %v467_v45 }
  0xc7   : > { %v503_v46 = vmax.f32 %v476_v40, 0.0  ;;  %v496_v49 = vmax.f32 %v458_v44, 0.0 }
  0xc8   : > { %v507_v48 = vmax.f32 %v486_v43, 0.0  ;;  %v500_v51 = vmax.f32 %v468_v47, 0.0 }
  0xc9   : > { %v519_v50 = vmin.f32 %v503_v46, 6.0  ;;  %v512_v53 = vmin.f32 %v496_v49, 6.0 }
  0xca   : > { %v523_v52 = vmin.f32 %v507_v48, 6.0  ;;  %v516_v54 = vmin.f32 %v500_v51, 6.0 }
  0xcb   : > { %536 = vst [vmem:[#allocation2 + $0xa8] sm:$0xff] %v519_v50 }
  0xcc   : > { %540 = vst [vmem:[#allocation2 + $0xe8] sm:$0xff] %v523_v52  ;;  %v477_v55 = vpop.f32.mrf.mxu2  ;;  %v460_v58 = vpop.f32.mrf.mxu0 }
  0xcd   : > { %529 = vst [vmem:[#allocation2 + $0x30] sm:$0xff] %v512_v53  ;;  %v478_v56 = vadd.f32 %v1611_v30, %v477_v55  ;;  %v487_v57 = vpop.f32.mrf.mxu3  ;;  %v461_v60 = vadd.f32 %v1611_v30, %v460_v58  ;;  %v470_v61 = vpop.f32.mrf.mxu1 }
  0xce   : > { %533 = vst [vmem:[#allocation2 + $0x70] sm:$0xff] %v516_v54  ;;  %v488_v59 = vadd.f32 %v1611_v30, %v487_v57  ;;  %v471_v63 = vadd.f32 %v1611_v30, %v470_v61 }
  0xcf   : > { %v504_v62 = vmax.f32 %v478_v56, 0.0  ;;  %v497_v1 = vmax.f32 %v461_v60, 0.0 }
  0xd0   : > { %v508_v0 = vmax.f32 %v488_v59, 0.0  ;;  %v501_v3 = vmax.f32 %v471_v63, 0.0 }
  0xd1   : > { %v520_v2 = vmin.f32 %v504_v62, 6.0  ;;  %v513_v5 = vmin.f32 %v497_v1, 6.0 }
  0xd2   : > { %v524_v4 = vmin.f32 %v508_v0, 6.0  ;;  %v517_v6 = vmin.f32 %v501_v3, 6.0 }
  0xd3   : > { %537 = vst [vmem:[#allocation2 + $0xb0] sm:$0xff] %v520_v2 }
  0xd4   : > { %541 = vst [vmem:[#allocation2 + $0xf0] sm:$0xff] %v524_v4  ;;  %v480_v7 = vpop.f32.mrf.mxu2  ;;  %v462_v10 = vpop.f32.mrf.mxu0 }
  0xd5   : > { %530 = vst [vmem:[#allocation2 + $0x48] sm:$0xff] %v513_v5  ;;  %v481_v8 = vadd.f32 %v1611_v30, %v480_v7  ;;  %v490_v9 = vpop.f32.mrf.mxu3  ;;  %v463_v12 = vadd.f32 %v1611_v30, %v462_v10  ;;  %v472_v13 = vpop.f32.mrf.mxu1 }
  0xd6   : > { %534 = vst [vmem:[#allocation2 + $0x88] sm:$0xff] %v517_v6  ;;  %v491_v11 = vadd.f32 %v1611_v30, %v490_v9  ;;  %v473_v15 = vadd.f32 %v1611_v30, %v472_v13 }
  0xd7   : > { %v505_v14 = vmax.f32 %v481_v8, 0.0  ;;  %v498_v17 = vmax.f32 %v463_v12, 0.0 }
  0xd8   : > { %v509_v16 = vmax.f32 %v491_v11, 0.0  ;;  %v502_v19 = vmax.f32 %v473_v15, 0.0 }
  0xd9   : > { %v521_v18 = vmin.f32 %v505_v14, 6.0  ;;  %v514_v21 = vmin.f32 %v498_v17, 6.0 }
  0xda   : > { %v525_v20 = vmin.f32 %v509_v16, 6.0  ;;  %v518_v22 = vmin.f32 %v502_v19, 6.0 }
  0xdb   : > { %538 = vst [vmem:[#allocation2 + $0xc8] sm:$0xff] %v521_v18 }
  0xdc   : > { %542 = vst [vmem:[#allocation2 + $0x108] sm:$0xff] %v525_v20  ;;  %v482_v23 = vpop.f32.mrf.mxu2 }
  0xdd   : > { %531 = vst [vmem:[#allocation2 + $0x50] sm:$0xff] %v514_v21  ;;  %v483_v24 = vadd.f32 %v1611_v30, %v482_v23  ;;  %v492_v25 = vpop.f32.mrf.mxu3 }
  0xde   : > { %535 = vst [vmem:[#allocation2 + $0x90] sm:$0xff] %v518_v22  ;;  %v493_v26 = vadd.f32 %v1611_v30, %v492_v25 }
  0xdf   : > { %v506_v27 = vmax.f32 %v483_v24, 0.0 }
  0xe0   : > { %v510_v28 = vmax.f32 %v493_v26, 0.0  ;;  %547 = sbr.rel (%p1240_p2) target bundleno = 375 (0x177), region = 64 }
  0xe1   : > { %v522_v29 = vmin.f32 %v506_v27, 6.0 }
  0xe2   : > { %v526_v31 = vmin.f32 %v510_v28, 6.0 }
  0xe3   : > { %539 = vst [vmem:[#allocation2 + $0xd0] sm:$0xff] %v522_v29 }
  0xe4   : > { %543 = vst [vmem:[#allocation2 + $0x110] sm:$0xff] %v526_v31 }
  0xe5   : > { %v554_v32 = vld [vmem:[%s2111_s1] sm:$0xf]  ;;  %v1244_v34 = vld [vmem:[%s1582_s26 + $0x88] sm:$0xff] }
  0xe6   : > { %v1243_v33 = vld [vmem:[%s1582_s26 + $0x80] sm:$0xff]  ;;  %v563_v35 = vsel %vm442_vm0, %v554_v32, 0 }
  0xe7   : > { %v553_v30 = vpack.c.bf16 %v1244_v34, %v1243_v33  ;;  %572 = vmatpush.bf16.msra.mxu0 %v563_v35  ;;  %v1334_v36 = vld [vmem:[%s2112_s2] ss:$0 sm:$0xff] }
  0xea   : > { %1245 = vmatmul.msk.bf16.vlgmr.msra.gmra.mxu0 %vm417_vm1, %v553_v30 }
 0x167   : > { %v574_v37 = vpop.f32.mrf.mxu0 }
 0x168   : > { %v575_v38 = vadd.f32 %v1334_v36, %v574_v37 }
 0x16a   : > { %v579_v39 = vmax.f32 %v575_v38, 0.0 }
 0x16c   : > { %v581_v40 = vmin.f32 %v579_v39, 6.0 }
 0x16e   : > { %584 = vst [vmem:[#allocation2 + $0x128] sm:$0xff] %v581_v40 }
 0x16f   : > { %v576_v41 = vpop.f32.mrf.mxu0 }
 0x170   : > { %v577_v42 = vadd.f32 %v1334_v36, %v576_v41 }
 0x172   : > { %v580_v43 = vmax.f32 %v577_v42, 0.0 }
 0x174   : > { %v582_v44 = vmin.f32 %v580_v43, 6.0 }
 0x176   : > { %585 = vst [vmem:[#allocation2 + $0x130] sm:$0xff] %v582_v44 }
 0x177 PF: > { %p1246_p4 = scmp.ne.s32.totalorder %s1416_s30, 1 }
 0x179   : > { %589 = sbr.rel (%p1246_p4) target bundleno = 385 (0x181), region = 68 }
 0x17e   : > { %v1436_v45 = vmov 0.0  }
 0x17f   : > { %591 = vst [vmem:[#allocation2 + $0x128] sm:$0xff] %v1436_v45 }
 0x180   : > { %592 = vst [vmem:[#allocation2 + $0x130] sm:$0xff] %v1436_v45 }
 0x181 PF: > { %v593_v46 = vld [vmem:[%s2113_s3] sm:$0xff]  ;;  %v1646_v48 = vld [vmem:[#allocation2 + $0xef] sm:$0xff]  ;;  %v1708_v23 = vld [vmem:[%s2113_s3 + $0x8] ss:$0 sm:$0xff]  ;;  %s1248_s11 = sshll.u32 %s1420_s9, 1  ;;  %s1119_s17 = sshll.u32 %s335_s16, 4  ;;  %s1120_s17 = int_to_ptr.vmem [resolvable:$true] %s1119_s17 }
 0x182   : > { %v1644_v47 = vld [vmem:[#allocation2 + $0xe7] sm:$0xff]  ;;  %v1648_v49 = vperm.slane %v593_v46, 0  ;;  %v1652_v51 = vld [vmem:[#allocation2 + $0xf0] sm:$0xff]  ;;  %v1654_v52 = vperm.slane %v593_v46, 1  ;;  %v1656_v53 = vperm.slane %v593_v46, 2  ;;  %v1664_v57 = vperm.slane %v593_v46, 3  ;;  %s1115_s15 = sadd.s32 %s1416_s30, %s1248_s11 }
 0x183   : > { %v1650_v50 = vld [vmem:[#allocation2 + $0xe8] sm:$0xff]  ;;  %v1660_v55 = vld [vmem:[#allocation2 + $0xf1] sm:$0xff]  ;;  %v1666_v58 = vperm.slane %v593_v46, 4  ;;  %v1668_v59 = vperm.slane %v593_v46, 5  ;;  %v1701_v19 = vperm.slane %v593_v46, 6  ;;  %v1703_v20 = vperm.slane %v593_v46, 7 }
 0x184   : > { %v1658_v54 = vld [vmem:[#allocation2 + $0xe9] sm:$0xff]  ;;  %v626_v60 = vmul.f32 %v1648_v49, %v1644_v47  ;;  %v627_v61 = vmul.f32 %v1648_v49, %v1646_v48  ;;  %v659_v62 = vmul.f32 %v1654_v52, %v1650_v50  ;;  %v660_v63 = vmul.f32 %v1654_v52, %v1652_v51  ;;  %v1691_v8 = vld [vmem:[#allocation2 + $0x111] sm:$0xff]  ;;  %s1249_s24 = sshll.u32 %s1115_s15, 3  ;;  %s2130_s9 = sand.u32 1, %s1408_s28  }
 0x185   : > { %v1662_v56 = vld [vmem:[#allocation2 + $0x107] sm:$0xff]  ;;  %v741_v0 = vld [vmem:[#allocation2 + $0x10f] sm:$0xff]  ;;  %v708_v3 = vmul.f32 %v1656_v53, %v1658_v54  ;;  %v709_v4 = vmul.f32 %v1656_v53, %v1660_v55  ;;  %v856_v18 = vmul.f32 %v1668_v59, %v1691_v8  ;;  %v755_v27 = vmul.f32 %v1664_v57, %v1644_v47  ;;  %s1117_s14 = scalar_lea.hbm %s2118_s8, %s1249_s24  ;;  %s1105_s30 = scalar_lea.sflag [#allocation4], %s2130_s9 }
 0x186   : > { %v1678_v1 = vld [vmem:[#allocation2 + $0x108] sm:$0xff]  ;;  %v1680_v2 = vld [vmem:[#allocation2 + $0x110] sm:$0xff]  ;;  %v757_v5 = vmul.f32 %v1664_v57, %v1662_v56  ;;  %v758_v6 = vmul.f32 %v1664_v57, %v741_v0  ;;  %v675_v10 = vadd.f32 %v659_v62, %v626_v60  ;;  %v676_v11 = vadd.f32 %v660_v63, %v627_v61  ;;  %s1121_s20 = sshll.u32 %s1117_s14, 4  ;;  %s1358_s15 = scalar_lea.hbm %s2118_s8, 32  ;;  %s1122_s20 = int_to_ptr.hbm [resolvable:$true] %s1121_s20 }
 0x187   : > { %v1689_v7 = vld [vmem:[#allocation2 + $0x109] sm:$0xff]  ;;  %v806_v12 = vmul.f32 %v1666_v58, %v1678_v1  ;;  %v807_v13 = vmul.f32 %v1666_v58, %v1680_v2  ;;  %v987_v22 = vld [vmem:[#allocation2 + $0x131] sm:$0xff]  ;;  %v756_v28 = vmul.f32 %v1664_v57, %v1646_v48  ;;  %s1352_s21 = sshra.s32 %s1122_s20, 4  ;;  %s1353_s21 = int_to_ptr.hbm [resolvable:$true] %s1352_s21 }
 0x188   : > { %v888_v9 = vld [vmem:[#allocation2 + $0x127] sm:$0xff]  ;;  %v889_v14 = vld [vmem:[#allocation2 + $0x12f] sm:$0xff]  ;;  %v855_v17 = vmul.f32 %v1668_v59, %v1689_v7  ;;  %v724_v24 = vadd.f32 %v708_v3, %v675_v10  ;;  %v725_v25 = vadd.f32 %v709_v4, %v676_v11  ;;  %v1004_v39 = vmul.f32 %v1708_v23, %v987_v22  ;;  %s1354_s22 = scalar_lea.hbm %s1353_s21, 8  ;;  %p1359_p9 = scmp.lt.s32.totalorder %s1353_s21, %s2118_s8 }
 0x189   : > { %v937_v15 = vld [vmem:[#allocation2 + $0x128] sm:$0xff]  ;;  %v938_v16 = vld [vmem:[#allocation2 + $0x130] sm:$0xff]  ;;  %v905_v29 = vmul.f32 %v1701_v19, %v888_v9  ;;  %v906_v31 = vmul.f32 %v1701_v19, %v889_v14  ;;  %v804_v4 = vmul.f32 %v1666_v58, %v1650_v50  ;;  %v853_v10 = vmul.f32 %v1668_v59, %v1658_v54  ;;  %p1355_p5 = scmp.ne.s32.totalorder %s1353_s21, %s1354_s22  ;;  %p1360_p10 = scmp.lt.s32.totalorder %s1358_s15, %s1354_s22 }
 0x18a   : > { %v986_v21 = vld [vmem:[#allocation2 + $0x129] sm:$0xff]  ;;  %v954_v32 = vmul.f32 %v1703_v20, %v937_v15  ;;  %v955_v33 = vmul.f32 %v1703_v20, %v938_v16  ;;  %v773_v36 = vadd.f32 %v757_v5, %v724_v24  ;;  %v774_v37 = vadd.f32 %v758_v6, %v725_v25  ;;  %v1730_v41 = vld [vmem:[#allocation2 + $0xd1] sm:$0xff] }
 0x18b   : > { %v1710_v26 = vld [vmem:[#allocation2 + $0xc7] sm:$0xff]  ;;  %v1720_v34 = vld [vmem:[#allocation2 + $0xcf] sm:$0xff]  ;;  %v1003_v38 = vmul.f32 %v1708_v23, %v986_v21  ;;  %v707_v62 = vmul.f32 %v1656_v53, %v1730_v41  ;;  %v805_v5 = vmul.f32 %v1666_v58, %v1652_v51  ;;  %v854_v11 = vmul.f32 %v1668_v59, %v1660_v55  ;;  %p1356_p6 = pnand %p1355_p5, %p1534_p3  ;;  %p1361_p11 = por %p1360_p10, %p1359_p9 }
 0x18c   : > { %v1722_v35 = vld [vmem:[#allocation2 + $0xc8] sm:$0xff]  ;;  %v1724_v30 = vld [vmem:[#allocation2 + $0xd0] sm:$0xff]  ;;  %v624_v42 = vmul.f32 %v1648_v49, %v1710_v26  ;;  %v625_v43 = vmul.f32 %v1648_v49, %v1720_v34  ;;  %v822_v46 = vadd.f32 %v806_v12, %v773_v36  ;;  %v823_v60 = vadd.f32 %v807_v13, %v774_v37 }
 0x18d   : > { %v1728_v40 = vld [vmem:[#allocation2 + $0xc9] sm:$0xff]  ;;  %v657_v44 = vmul.f32 %v1654_v52, %v1722_v35  ;;  %v658_v45 = vmul.f32 %v1654_v52, %v1724_v30  ;;  %v903_v14 = vmul.f32 %v1701_v19, %v1662_v56  ;;  %v904_v15 = vmul.f32 %v1701_v19, %v741_v0  ;;  %p1357_p7 = pneg %p1356_p6 }
 0x18e   : > { %v706_v61 = vmul.f32 %v1656_v53, %v1728_v40  ;;  %v871_v6 = vadd.f32 %v855_v17, %v822_v46  ;;  %v872_v9 = vadd.f32 %v856_v18, %v823_v60  ;;  %v1755_v16 = vld [vmem:[#allocation2 + $0xa7] sm:$0xff]  ;;  %v1757_v21 = vld [vmem:[#allocation2 + $0xaf] sm:$0xff]  ;;  %v952_v18 = vmul.f32 %v1703_v20, %v1678_v1 }
 0x18f   : > { %v673_v63 = vadd.f32 %v657_v44, %v624_v42  ;;  %v674_v3 = vadd.f32 %v658_v45, %v625_v43  ;;  %v953_v24 = vmul.f32 %v1703_v20, %v1680_v2  ;;  %v1763_v25 = vld [vmem:[#allocation2 + $0xa8] sm:$0xff]  ;;  %v1765_v36 = vld [vmem:[#allocation2 + $0xb0] sm:$0xff]  ;;  %v1001_v0 = vmul.f32 %v1708_v23, %v1689_v7  ;;  %v1778_v2 = vld [vmem:[%s2114_s4] ss:$0 sm:$0xff]  ;;  %p1362_p12 = pnand %p1361_p11, %p1357_p7 }
 0x190   : > { %v921_v22 = vadd.f32 %v905_v29, %v871_v6  ;;  %v922_v17 = vadd.f32 %v906_v31, %v872_v9  ;;  %v1002_v42 = vmul.f32 %v1708_v23, %v1691_v8  ;;  %v1771_v29 = vld [vmem:[#allocation2 + $0xa9] sm:$0xff]  ;;  %v1773_v31 = vld [vmem:[#allocation2 + $0xb1] sm:$0xff]  ;;  %v623_v7 = vmul.f32 %v1648_v49, %v1757_v21 }
 0x191   : > { %v722_v12 = vadd.f32 %v706_v61, %v673_v63  ;;  %v723_v13 = vadd.f32 %v707_v62, %v674_v3  ;;  %v655_v8 = vmul.f32 %v1654_v52, %v1763_v25  ;;  %v704_v46 = vmul.f32 %v1656_v53, %v1771_v29 }
 0x192   : > { %v970_v1 = vadd.f32 %v954_v32, %v921_v22  ;;  %v971_v43 = vadd.f32 %v955_v33, %v922_v17  ;;  %v656_v32 = vmul.f32 %v1654_v52, %v1765_v36  ;;  %v705_v60 = vmul.f32 %v1656_v53, %v1773_v31 }
 0x193   : > { %v771_v37 = vadd.f32 %v755_v27, %v722_v12  ;;  %v772_v56 = vadd.f32 %v756_v28, %v723_v13  ;;  %v622_v27 = vmul.f32 %v1648_v49, %v1755_v16  ;;  %v753_v6 = vmul.f32 %v1664_v57, %v1710_v26 }
 0x194   : > { %v1019_v33 = vadd.f32 %v1003_v38, %v970_v1  ;;  %v1020_v45 = vadd.f32 %v1004_v39, %v971_v43  ;;  %v672_v3 = vadd.f32 %v656_v32, %v623_v7  ;;  %v754_v38 = vmul.f32 %v1664_v57, %v1720_v34 }
 0x195   : > { %v820_v28 = vadd.f32 %v804_v4, %v771_v37  ;;  %v821_v44 = vadd.f32 %v805_v5, %v772_v56  ;;  %v671_v63 = vadd.f32 %v655_v8, %v622_v27 }
 0x196   : > { %v1039_v4 = vadd.f32 %v1778_v2, %v1019_v33  ;;  %v1040_v5 = vadd.f32 %v1778_v2, %v1020_v45  ;;  %v721_v13 = vadd.f32 %v705_v60, %v672_v3  ;;  %v1806_v33 = vld [vmem:[#allocation2 + $0x87] sm:$0xff]  ;;  %v1814_v60 = vld [vmem:[#allocation2 + $0x8f] sm:$0xff] }
 0x197   : > { %v869_v61 = vadd.f32 %v853_v10, %v820_v28  ;;  %v870_v62 = vadd.f32 %v854_v11, %v821_v44  ;;  %v720_v12 = vadd.f32 %v704_v46, %v671_v63  ;;  %v802_v10 = vmul.f32 %v1666_v58, %v1722_v35  ;;  %v1818_v63 = vld [vmem:[#allocation2 + $0x88] sm:$0xff]  ;;  %v1820_v3 = vld [vmem:[#allocation2 + $0x90] sm:$0xff] }
 0x198   : > { %v1055_v22 = vmax.f32 %v1039_v4, 0.0  ;;  %v1056_v17 = vmax.f32 %v1040_v5, 0.0  ;;  %v803_v11 = vmul.f32 %v1666_v58, %v1724_v30  ;;  %v770_v43 = vadd.f32 %v754_v38, %v721_v13  ;;  %v1822_v4 = vld [vmem:[#allocation2 + $0x89] sm:$0xff] }
 0x199   : > { %v919_v39 = vadd.f32 %v903_v14, %v869_v61  ;;  %v920_v9 = vadd.f32 %v904_v15, %v870_v62  ;;  %v769_v1 = vadd.f32 %v753_v6, %v720_v12  ;;  %v851_v14 = vmul.f32 %v1668_v59, %v1728_v40  ;;  %v1832_v12 = vld [vmem:[#allocation2 + $0x91] sm:$0xff] }
 0x19a   : > { %v1071_v27 = vmin.f32 %v1055_v22, 6.0  ;;  %v1072_v7 = vmin.f32 %v1056_v17, 6.0  ;;  %v852_v15 = vmul.f32 %v1668_v59, %v1730_v41  ;;  %v819_v32 = vadd.f32 %v803_v11, %v770_v43 }
 0x19b   : > { %v968_v37 = vadd.f32 %v952_v18, %v919_v39  ;;  %v969_v56 = vadd.f32 %v953_v24, %v920_v9  ;;  %v818_v8 = vadd.f32 %v802_v10, %v769_v1  ;;  %v901_v18 = vmul.f32 %v1701_v19, %v1644_v47 }
 0x19c   : > { %v1080_v45 = vpack.c.bf16 %v1072_v7, %v1071_v27  ;;  %v902_v24 = vmul.f32 %v1701_v19, %v1646_v48  ;;  %v950_v46 = vmul.f32 %v1703_v20, %v1650_v50  ;;  %v868_v62 = vadd.f32 %v852_v15, %v819_v32 }
 0x19d   : > { %v1017_v28 = vadd.f32 %v1001_v0, %v968_v37  ;;  %v1018_v44 = vadd.f32 %v1002_v42, %v969_v56  ;;  %v867_v42 = vadd.f32 %v851_v14, %v818_v8  ;;  %v951_v47 = vmul.f32 %v1703_v20, %v1652_v51 }
 0x19e   : > { %1088 = vmatpush.bf16.xpose.msra.mxu0 %v1080_v45  ;;  %v999_v48 = vmul.f32 %v1708_v23, %v1658_v54  ;;  %v1000_v50 = vmul.f32 %v1708_v23, %v1660_v55  ;;  %v620_v5 = vmul.f32 %v1648_v49, %v1806_v33  ;;  %v918_v9 = vadd.f32 %v902_v24, %v868_v62 }
 0x19f   : > { %v1037_v61 = vadd.f32 %v1778_v2, %v1017_v28  ;;  %v1038_v0 = vadd.f32 %v1778_v2, %v1018_v44  ;;  %v917_v39 = vadd.f32 %v901_v18, %v867_v42  ;;  %v621_v13 = vmul.f32 %v1648_v49, %v1814_v60 }
 0x1a0   : > { %v653_v51 = vmul.f32 %v1654_v52, %v1818_v63  ;;  %v654_v54 = vmul.f32 %v1654_v52, %v1820_v3  ;;  %v702_v55 = vmul.f32 %v1656_v53, %v1822_v4  ;;  %v967_v11 = vadd.f32 %v951_v47, %v918_v9  ;;  %v1862_v47 = vld [vmem:[#allocation2 + $0x67] sm:$0xff]  ;;  %v1872_v9 = vld [vmem:[#allocation2 + $0x70] sm:$0xff] }
 0x1a1   : > { %v1053_v6 = vmax.f32 %v1037_v61, 0.0  ;;  %v1054_v38 = vmax.f32 %v1038_v0, 0.0  ;;  %v966_v10 = vadd.f32 %v950_v46, %v917_v39  ;;  %v703_v1 = vmul.f32 %v1656_v53, %v1832_v12  ;;  %v1870_v39 = vld [vmem:[#allocation2 + $0x68] sm:$0xff] }
 0x1a2   : > { %v669_v37 = vadd.f32 %v653_v51, %v620_v5  ;;  %v670_v56 = vadd.f32 %v654_v54, %v621_v13  ;;  %v751_v43 = vmul.f32 %v1664_v57, %v1755_v16  ;;  %v1016_v14 = vadd.f32 %v1000_v50, %v967_v11  ;;  %v1878_v54 = vld [vmem:[#allocation2 + $0x69] sm:$0xff] }
 0x1a3   : > { %v1069_v22 = vmin.f32 %v1053_v6, 6.0  ;;  %v1070_v17 = vmin.f32 %v1054_v38, 6.0  ;;  %v1015_v7 = vadd.f32 %v999_v48, %v966_v10  ;;  %v752_v15 = vmul.f32 %v1664_v57, %v1757_v21  ;;  %v1864_v48 = vld [vmem:[#allocation2 + $0x6f] sm:$0xff] }
 0x1a4   : > { %v718_v28 = vadd.f32 %v702_v55, %v669_v37  ;;  %v719_v44 = vadd.f32 %v703_v1, %v670_v56  ;;  %v800_v8 = vmul.f32 %v1666_v58, %v1763_v25  ;;  %v801_v32 = vmul.f32 %v1666_v58, %v1765_v36  ;;  %v1880_v55 = vld [vmem:[#allocation2 + $0x71] sm:$0xff] }
 0x1a5   : > { %v1079_v27 = vpack.c.bf16 %v1070_v17, %v1069_v22  ;;  %v1035_v45 = vadd.f32 %v1778_v2, %v1015_v7  ;;  %v1036_v18 = vadd.f32 %v1778_v2, %v1016_v14  ;;  %v849_v24 = vmul.f32 %v1668_v59, %v1771_v29 }
 0x1a6   : > { %v850_v46 = vmul.f32 %v1668_v59, %v1773_v31  ;;  %v767_v61 = vadd.f32 %v751_v43, %v718_v28  ;;  %v768_v0 = vadd.f32 %v752_v15, %v719_v44  ;;  %v899_v42 = vmul.f32 %v1701_v19, %v1710_v26 }
 0x1a7   : > { %1089 = vmatpush.bf16.xpose.msra.mxu0 %v1079_v27  ;;  %v900_v62 = vmul.f32 %v1701_v19, %v1720_v34  ;;  %v1051_v50 = vmax.f32 %v1035_v45, 0.0  ;;  %v1052_v5 = vmax.f32 %v1036_v18, 0.0  ;;  %v948_v6 = vmul.f32 %v1703_v20, %v1722_v35 }
 0x1a8   : > { %v949_v38 = vmul.f32 %v1703_v20, %v1724_v30  ;;  %v816_v26 = vadd.f32 %v800_v8, %v767_v61  ;;  %v817_v13 = vadd.f32 %v801_v32, %v768_v0  ;;  %v997_v34 = vmul.f32 %v1708_v23, %v1728_v40  ;;  %v1904_v61 = vld [vmem:[#allocation2 + $0x47] sm:$0xff] }
 0x1a9   : > { %v998_v51 = vmul.f32 %v1708_v23, %v1730_v41  ;;  %v1067_v35 = vmin.f32 %v1051_v50, 6.0  ;;  %v1068_v22 = vmin.f32 %v1052_v5, 6.0  ;;  %v618_v30 = vmul.f32 %v1648_v49, %v1862_v47  ;;  %v1914_v5 = vld [vmem:[#allocation2 + $0x4f] sm:$0xff] }
 0x1aa   : > { %v619_v17 = vmul.f32 %v1648_v49, %v1864_v48  ;;  %v865_v10 = vadd.f32 %v849_v24, %v816_v26  ;;  %v866_v11 = vadd.f32 %v850_v46, %v817_v13  ;;  %v651_v40 = vmul.f32 %v1654_v52, %v1870_v39 }
 0x1ab   : > { %v652_v41 = vmul.f32 %v1654_v52, %v1872_v9  ;;  %v1078_v37 = vpack.c.bf16 %v1068_v22, %v1067_v35  ;;  %v700_v56 = vmul.f32 %v1656_v53, %v1878_v54  ;;  %v701_v1 = vmul.f32 %v1656_v53, %v1880_v55  ;;  %v1916_v35 = vld [vmem:[#allocation2 + $0x48] sm:$0xff]  ;;  %v1918_v22 = vld [vmem:[#allocation2 + $0x50] sm:$0xff] }
 0x1ac   : > { %v749_v43 = vmul.f32 %v1664_v57, %v1806_v33  ;;  %v915_v27 = vadd.f32 %v899_v42, %v865_v10  ;;  %v916_v7 = vadd.f32 %v900_v62, %v866_v11  ;;  %v667_v14 = vadd.f32 %v651_v40, %v618_v30  ;;  %v1920_v30 = vld [vmem:[#allocation2 + $0x49] sm:$0xff]  ;;  %v1932_v40 = vld [vmem:[#allocation2 + $0x51] sm:$0xff] }
 0x1ad   : > { %v668_v15 = vadd.f32 %v652_v41, %v619_v17  ;;  %v750_v28 = vmul.f32 %v1664_v57, %v1814_v60  ;;  %v798_v44 = vmul.f32 %v1666_v58, %v1818_v63  ;;  %v799_v8 = vmul.f32 %v1666_v58, %v1820_v3 }
 0x1ae   : > { %v847_v32 = vmul.f32 %v1668_v59, %v1822_v4  ;;  %v964_v45 = vadd.f32 %v948_v6, %v915_v27  ;;  %v965_v18 = vadd.f32 %v949_v38, %v916_v7  ;;  %v716_v24 = vadd.f32 %v700_v56, %v667_v14 }
 0x1af   : > { %1090 = vmatpush.bf16.xpose.msra.mxu0 %v1078_v37  ;;  %v717_v46 = vadd.f32 %v701_v1, %v668_v15  ;;  %v848_v0 = vmul.f32 %v1668_v59, %v1832_v12  ;;  %v897_v42 = vmul.f32 %v1701_v19, %v1755_v16  ;;  %v898_v62 = vmul.f32 %v1701_v19, %v1757_v21 }
 0x1b0   : > { %v946_v50 = vmul.f32 %v1703_v20, %v1763_v25  ;;  %v1013_v6 = vadd.f32 %v997_v34, %v964_v45  ;;  %v1014_v38 = vadd.f32 %v998_v51, %v965_v18  ;;  %v765_v26 = vadd.f32 %v749_v43, %v716_v24 }
 0x1b1   : > { %v766_v13 = vadd.f32 %v750_v28, %v717_v46  ;;  %v947_v16 = vmul.f32 %v1703_v20, %v1765_v36  ;;  %v995_v21 = vmul.f32 %v1708_v23, %v1771_v29  ;;  %v996_v25 = vmul.f32 %v1708_v23, %v1773_v31 }
 0x1b2   : > { %v616_v34 = vmul.f32 %v1648_v49, %v1904_v61  ;;  %v1033_v51 = vadd.f32 %v1778_v2, %v1013_v6  ;;  %v1034_v17 = vadd.f32 %v1778_v2, %v1014_v38  ;;  %v814_v10 = vadd.f32 %v798_v44, %v765_v26 }
 0x1b3   : > { %v815_v11 = vadd.f32 %v799_v8, %v766_v13  ;;  %v617_v36 = vmul.f32 %v1648_v49, %v1914_v5  ;;  %v649_v29 = vmul.f32 %v1654_v52, %v1916_v35  ;;  %v650_v31 = vmul.f32 %v1654_v52, %v1918_v22 }
 0x1b4   : > { %v698_v41 = vmul.f32 %v1656_v53, %v1920_v30  ;;  %v1049_v37 = vmax.f32 %v1033_v51, 0.0  ;;  %v1050_v56 = vmax.f32 %v1034_v17, 0.0  ;;  %v863_v1 = vadd.f32 %v847_v32, %v814_v10 }
 0x1b5   : > { %v864_v43 = vadd.f32 %v848_v0, %v815_v11  ;;  %v665_v27 = vadd.f32 %v649_v29, %v616_v34  ;;  %v666_v7 = vadd.f32 %v650_v31, %v617_v36  ;;  %v699_v14 = vmul.f32 %v1656_v53, %v1932_v40  ;;  %v1962_v11 = vld [vmem:[#allocation2 + $0x2f] sm:$0xff] }
 0x1b6   : > { %v747_v15 = vmul.f32 %v1664_v57, %v1862_v47  ;;  %v1065_v28 = vmin.f32 %v1049_v37, 6.0  ;;  %v1066_v44 = vmin.f32 %v1050_v56, 6.0  ;;  %v913_v8 = vadd.f32 %v897_v42, %v863_v1  ;;  %v1978_v1 = vld [vmem:[#allocation2 + $0x29] sm:$0xff] }
 0x1b7   : > { %v914_v45 = vadd.f32 %v898_v62, %v864_v43  ;;  %v714_v18 = vadd.f32 %v698_v41, %v665_v27  ;;  %v715_v24 = vadd.f32 %v699_v14, %v666_v7  ;;  %v748_v46 = vmul.f32 %v1664_v57, %v1864_v48 }
 0x1b8   : > { %v796_v32 = vmul.f32 %v1666_v58, %v1870_v39  ;;  %v1077_v0 = vpack.c.bf16 %v1066_v44, %v1065_v28  ;;  %v962_v6 = vadd.f32 %v946_v50, %v913_v8  ;;  %v797_v26 = vmul.f32 %v1666_v58, %v1872_v9 }
 0x1b9   : > { %v963_v38 = vadd.f32 %v947_v16, %v914_v45  ;;  %v763_v13 = vadd.f32 %v747_v15, %v714_v18  ;;  %v764_v34 = vadd.f32 %v748_v46, %v715_v24  ;;  %v845_v42 = vmul.f32 %v1668_v59, %v1878_v54  ;;  %v1960_v16 = vld [vmem:[#allocation2 + $0x27] sm:$0xff] }
 0x1ba   : > { %v846_v62 = vmul.f32 %v1668_v59, %v1880_v55  ;;  %1091 = vmatpush.bf16.xpose.msra.mxu0 %v1077_v0  ;;  %v1011_v51 = vadd.f32 %v995_v21, %v962_v6  ;;  %v895_v10 = vmul.f32 %v1701_v19, %v1806_v33  ;;  %v896_v50 = vmul.f32 %v1701_v19, %v1814_v60  ;;  %v1968_v21 = vld [vmem:[#allocation2 + $0x28] sm:$0xff] }
 0x1bb   : > { %v1012_v17 = vadd.f32 %v996_v25, %v963_v38  ;;  %v812_v36 = vadd.f32 %v796_v32, %v763_v13  ;;  %v813_v29 = vadd.f32 %v797_v26, %v764_v34  ;;  %v944_v31 = vmul.f32 %v1703_v20, %v1818_v63  ;;  %v1970_v25 = vld [vmem:[#allocation2 + $0x30] sm:$0xff] }
 0x1bc   : > { %v945_v41 = vmul.f32 %v1703_v20, %v1820_v3  ;;  %v1031_v33 = vadd.f32 %v1778_v2, %v1011_v51  ;;  %v993_v37 = vmul.f32 %v1708_v23, %v1822_v4  ;;  %v994_v56 = vmul.f32 %v1708_v23, %v1832_v12  ;;  %v1980_v63 = vld [vmem:[#allocation2 + $0x31] sm:$0xff] }
 0x1bd   : > { %v1032_v60 = vadd.f32 %v1778_v2, %v1012_v17  ;;  %v861_v43 = vadd.f32 %v845_v42, %v812_v36  ;;  %v862_v3 = vadd.f32 %v846_v62, %v813_v29  ;;  %v614_v27 = vmul.f32 %v1648_v49, %v1960_v16 }
 0x1be   : > { %v615_v7 = vmul.f32 %v1648_v49, %v1962_v11  ;;  %v1047_v14 = vmax.f32 %v1031_v33, 0.0  ;;  %v647_v4 = vmul.f32 %v1654_v52, %v1968_v21  ;;  %v648_v12 = vmul.f32 %v1654_v52, %v1970_v25  ;;  %v595_v33 = vld [vmem:[#allocation2 + $0x7] sm:$0xff] }
 0x1bf   : > { %v1048_v15 = vmax.f32 %v1032_v60, 0.0  ;;  %v911_v28 = vadd.f32 %v895_v10, %v861_v43  ;;  %v912_v44 = vadd.f32 %v896_v50, %v862_v3  ;;  %v696_v8 = vmul.f32 %v1656_v53, %v1978_v1  ;;  %v596_v3 = vld [vmem:[#allocation2 + $0xf] sm:$0xff] }
 0x1c0   : > { %v697_v45 = vmul.f32 %v1656_v53, %v1980_v63  ;;  %v1063_v18 = vmin.f32 %v1047_v14, 6.0  ;;  %v663_v46 = vadd.f32 %v647_v4, %v614_v27  ;;  %v664_v32 = vadd.f32 %v648_v12, %v615_v7  ;;  %v628_v27 = vld [vmem:[#allocation2 + $0x8] sm:$0xff]  ;;  %v629_v4 = vld [vmem:[#allocation2 + $0x10] sm:$0xff] }
 0x1c1   : > { %v1064_v24 = vmin.f32 %v1048_v15, 6.0  ;;  %v960_v0 = vadd.f32 %v944_v31, %v911_v28  ;;  %v961_v6 = vadd.f32 %v945_v41, %v912_v44  ;;  %v745_v38 = vmul.f32 %v1664_v57, %v1904_v61  ;;  %v677_v12 = vld [vmem:[#allocation2 + $0x9] sm:$0xff] }
 0x1c2   : > { %v746_v26 = vmul.f32 %v1664_v57, %v1914_v5  ;;  %v712_v34 = vadd.f32 %v696_v8, %v663_v46  ;;  %v713_v42 = vadd.f32 %v697_v45, %v664_v32  ;;  %v794_v62 = vmul.f32 %v1666_v58, %v1916_v35 }
 0x1c3   : > { %v1076_v13 = vpack.c.bf16 %v1064_v24, %v1063_v18  ;;  %v1009_v51 = vadd.f32 %v993_v37, %v960_v0  ;;  %v1010_v17 = vadd.f32 %v994_v56, %v961_v6  ;;  %v795_v10 = vmul.f32 %v1666_v58, %v1918_v22 }
 0x1c4   : > { %v843_v50 = vmul.f32 %v1668_v59, %v1920_v30  ;;  %v761_v36 = vadd.f32 %v745_v38, %v712_v34  ;;  %v762_v29 = vadd.f32 %v746_v26, %v713_v42  ;;  %v844_v31 = vmul.f32 %v1668_v59, %v1932_v40 }
 0x1c5   : > { %1092 = vmatpush.bf16.xpose.msra.mxu0 %v1076_v13  ;;  %v893_v41 = vmul.f32 %v1701_v19, %v1862_v47  ;;  %v1029_v60 = vadd.f32 %v1778_v2, %v1009_v51  ;;  %v1030_v37 = vadd.f32 %v1778_v2, %v1010_v17  ;;  %v894_v56 = vmul.f32 %v1701_v19, %v1864_v48 }
 0x1c6   : > { %v942_v43 = vmul.f32 %v1703_v20, %v1870_v39  ;;  %v810_v7 = vadd.f32 %v794_v62, %v761_v36  ;;  %v811_v14 = vadd.f32 %v795_v10, %v762_v29  ;;  %v943_v15 = vmul.f32 %v1703_v20, %v1872_v9  ;;  %v678_v39 = vld [vmem:[#allocation2 + $0x11] sm:$0xff] }
 0x1c7   : > { %v991_v47 = vmul.f32 %v1708_v23, %v1878_v54  ;;  %v1045_v28 = vmax.f32 %v1029_v60, 0.0  ;;  %v1046_v44 = vmax.f32 %v1030_v37, 0.0  ;;  %v992_v48 = vmul.f32 %v1708_v23, %v1880_v55 }
 0x1c8   : > { %v612_v8 = vmul.f32 %v1648_v49, %v595_v33  ;;  %v859_v45 = vadd.f32 %v843_v50, %v810_v7  ;;  %v860_v18 = vadd.f32 %v844_v31, %v811_v14  ;;  %v613_v24 = vmul.f32 %v1648_v49, %v596_v3 }
 0x1c9   : > { %v645_v46 = vmul.f32 %v1654_v52, %v628_v27  ;;  %v1061_v9 = vmin.f32 %v1045_v28, 6.0  ;;  %v1062_v32 = vmin.f32 %v1046_v44, 6.0  ;;  %v646_v54 = vmul.f32 %v1654_v52, %v629_v4 }
 0x1ca   : > { %v694_v0 = vmul.f32 %v1656_v53, %v677_v12  ;;  %v909_v6 = vadd.f32 %v893_v41, %v859_v45  ;;  %v910_v38 = vadd.f32 %v894_v56, %v860_v18  ;;  %v695_v55 = vmul.f32 %v1656_v53, %v678_v39  ;;  %v1101_v39 = vld [vmem:[%s1571_s10] sm:$0xff] }
 0x1cb   : > { %v661_v26 = vadd.f32 %v645_v46, %v612_v8  ;;  %v1075_v13 = vpack.c.bf16 %v1062_v32, %v1061_v9  ;;  %v662_v34 = vadd.f32 %v646_v54, %v613_v24  ;;  %v743_v42 = vmul.f32 %v1664_v57, %v1960_v16 }
 0x1cc   : > { %v744_v49 = vmul.f32 %v1664_v57, %v1962_v11  ;;  %v958_v62 = vadd.f32 %v942_v43, %v909_v6  ;;  %v959_v51 = vadd.f32 %v943_v15, %v910_v38  ;;  %v792_v52 = vmul.f32 %v1666_v58, %v1968_v21 }
 0x1cd   : > { %v710_v17 = vadd.f32 %v694_v0, %v661_v26  ;;  %1093 = vmatpush.bf16.xpose.msra.mxu0 %v1075_v13  ;;  %v711_v10 = vadd.f32 %v695_v55, %v662_v34  ;;  %v793_v50 = vmul.f32 %v1666_v58, %v1970_v25  ;;  %v841_v16 = vmul.f32 %v1668_v59, %v1978_v1  ;;  %v1082_v58 = vld [vmem:[%s2116_s6] sm:$0xff] }
 0x1ce   : > { %v1007_v53 = vadd.f32 %v991_v47, %v958_v62  ;;  %v1008_v36 = vadd.f32 %v992_v48, %v959_v51  ;;  %v842_v57 = vmul.f32 %v1668_v59, %v1980_v63  ;;  %v891_v33 = vmul.f32 %v1701_v19, %v1904_v61 }
 0x1cf   : > { %v759_v29 = vadd.f32 %v743_v42, %v710_v17  ;;  %v760_v31 = vadd.f32 %v744_v49, %v711_v10  ;;  %v892_v1 = vmul.f32 %v1701_v19, %v1914_v5  ;;  %v940_v59 = vmul.f32 %v1703_v20, %v1916_v35 }
 0x1d0   : > { %v1027_v11 = vadd.f32 %v1778_v2, %v1007_v53  ;;  %v1028_v41 = vadd.f32 %v1778_v2, %v1008_v36  ;;  %v1437_v63 = vmov 0   ;;  %v941_v61 = vmul.f32 %v1703_v20, %v1918_v22 }
 0x1d1   : > { %v808_v21 = vadd.f32 %v792_v52, %v759_v29  ;;  %v809_v25 = vadd.f32 %v793_v50, %v760_v31  ;;  %1335 = vset.pattern.permute.xlu0 %v1437_v63  ;;  %v989_v14 = vmul.f32 %v1708_v23, %v1920_v30  ;;  %v990_v5 = vmul.f32 %v1708_v23, %v1932_v40  ;;  %v1081_v23 = vld [vmem:[%s2115_s5] sm:$0xf] }
 0x1d2   : > { %v1043_v60 = vmax.f32 %v1027_v11, 0.0  ;;  %v1044_v37 = vmax.f32 %v1028_v41, 0.0  ;;  %1085 = vperm.xlu0 %1335, %v1082_v58  }
 0x1d3   : > { %v857_v56 = vadd.f32 %v841_v16, %v808_v21  ;;  %v858_v43 = vadd.f32 %v842_v57, %v809_v25 }
 0x1d4   : > { %v1059_v3 = vmin.f32 %v1043_v60, 6.0  ;;  %v1060_v27 = vmin.f32 %v1044_v37, 6.0 }
 0x1d5   : > { %v907_v7 = vadd.f32 %v891_v33, %v857_v56  ;;  %v908_v19 = vadd.f32 %v892_v1, %v858_v43 }
 0x1d6   : > { %v1074_v15 = vpack.c.bf16 %v1060_v27, %v1059_v3 }
 0x1d7   : > { %v956_v35 = vadd.f32 %v940_v59, %v907_v7  ;;  %v957_v47 = vadd.f32 %v941_v61, %v908_v19 }
 0x1d8   : > { %1094 = vmatpush.bf16.xpose.msra.mxu0 %v1074_v15 }
 0x1d9   : > { %v1005_v4 = vadd.f32 %v989_v14, %v956_v35  ;;  %v1006_v12 = vadd.f32 %v990_v5, %v957_v47 }
 0x1db   : > { %v1025_v20 = vadd.f32 %v1778_v2, %v1005_v4  ;;  %v1026_v22 = vadd.f32 %v1778_v2, %v1006_v12 }
 0x1dd   : > { %v1041_v28 = vmax.f32 %v1025_v20, 0.0  ;;  %v1042_v30 = vmax.f32 %v1026_v22, 0.0 }
 0x1df   : > { %v1057_v44 = vmin.f32 %v1041_v28, 6.0  ;;  %v1058_v48 = vmin.f32 %v1042_v30, 6.0 }
 0x1e1   : > { %v1073_v8 = vpack.c.bf16 %v1058_v48, %v1057_v44 }
 0x1e3   : > { %1095 = vmatpush.bf16.xpose.msra.mxu0 %v1073_v8 }
 0x1ea   : > { %1096 = vmatmul.bf16.vlgmr.msra.gmra.mxu0 %v1081_v23 }
 0x244   : > { %v1086_v2 = vpop.permute.xlu0 %1085 }
 0x267   : > { %v1097_v40 = vpop.f32.mrf.mxu0 }
 0x268   : > { %v1098_v45 = vadd.f32 %v1097_v40, %v1086_v2 }
 0x26a   : > { %v1102_v18 = vadd.f32 %v1101_v39, %v1098_v45 }
 0x26c   : > { %1103 = vst [vmem:[%s335_s16] sm:$0xff] %v1102_v18 }
 0x26d   : > { %1365 = shalt.err (!%p1362_p12)
}
 0x26e   : > { %1258 = dma.vmem_to_hbm [thread:$0]  (%p1534_p3), %s1120_s17, 128, %s1122_s20, %s1105_s30  }
 0x26f   : > { %v1099_v24 = vpop.f32.mrf.mxu0 }
 0x270 PF: > { %p1264_p13 = scmp.ge.s32.totalorder %s1432_s12, 2  ;;  %s1133_s25 = sand.u32 1, %s1404_s27  }
 0x271   : > { %s1134_s16 = scalar_lea.sflag [#allocation4], %s1133_s25 }
 0x272   : > { %p1261_p0 = pnand %p1264_p13, %p1543_p8 }
 0x274   : > { %p1262_p1 = pneg %p1261_p0 }
 0x276   : > { %1399 = dma.done.wait (%p1262_p1), %s1134_s16, 128  }
 0x277   : > { %1401 = vsyncadd (%p1262_p1), %s1134_s16, 4294967168  ;;  %s21_s12 = sadd.s32 1, %s1432_s12   ;;  %s2131_s30 = sld [smem:[#allocation6_spill]] }
 0x278   : > { %p18_p2 = scmp.ge.s32.totalorder %s21_s12, 6   ;;  %s2132_s9 = sld [smem:[#allocation7_spill]] }
 0x279   : > { %s2133_s10 = sld [smem:[#allocation8_spill]]  ;;  %s2135_s27 = smov %s1408_s28 }
 0x27a   : > { %s2134_s11 = sld [smem:[#allocation9_spill]]  ;;  %s2136_s28 = smov %s1412_s29 }
 0x27b   : > { %s2137_s29 = smov %s1552_s23  ;;  %20 = sbr.rel (!%p18_p2) target bundleno = 5 (0x5), region = 113 }
 0x280   :  { %1140 = vsyncpa [#allocation4], 1 }
 0x281   :  { %1142 = vsyncpa [#allocation4 + $0x1], 1 }

</bundles_post_ra>
